<compile_context>
chip_gen: v7x
topology: tpu7x:2x2x1
jax: 0.10.0
libtpu: 0.0.40
codegen_flags: <defaults>
</compile_context>

<pallas_src>
import functools

import jax
import jax.numpy as jnp
import numpy as np
from jax.experimental import pallas as pl
from jax.experimental.pallas import tpu as pltpu

LN_EPS = 1e-5  # PyTorch nn.LayerNorm default


# ----------------------------------------------------------------------------- kernels

def _layer_norm(h, g, b):
    m = jnp.mean(h, axis=-1, keepdims=True)
    v = jnp.mean((h - m) * (h - m), axis=-1, keepdims=True)
    return (h - m) * jax.lax.rsqrt(v + LN_EPS) * g + b


def _attn_block_kernel(x_ref, y_ref, wq_ref, bq_ref, wkv_ref, bkv_ref,
                       wp_ref, bp_ref, g_ref, beta_ref, o_ref, *, num_heads, scale):
    """MultiHeadAttention(x, y) + residual(x) + LayerNorm, one batch element per grid step."""
    x = x_ref[...]                       # (N, C)   -- batch dim squeezed by BlockSpec
    y = y_ref[...]                       # (M, Cr)

    q = jnp.dot(x, wq_ref[...], preferred_element_type=jnp.float32) + bq_ref[...]     # (N, C)
    kv = jnp.dot(y, wkv_ref[...], preferred_element_type=jnp.float32) + bkv_ref[...]  # (M, 2C)
    c = q.shape[-1]
    k = kv[:, :c]                        # keys   (torch reshape(..., 2, h, d)[:, :, 0])
    v = kv[:, c:]                        # values
    dh = c // num_heads

    head_outs = []
    for h in range(num_heads):           # static unroll over heads (small, e.g. 4)
        qh = q[:, h * dh:(h + 1) * dh]
        kh = k[:, h * dh:(h + 1) * dh]
        vh = v[:, h * dh:(h + 1) * dh]
        # s = qh @ kh^T  (einsum 'nd,md->nm'), scaled scores
        s = jax.lax.dot_general(qh, kh, (((1,), (1,)), ((), ())),
                                preferred_element_type=jnp.float32) * scale            # (N, M)
        s = s - jnp.max(s, axis=-1, keepdims=True)
        p = jnp.exp(s)
        p = p / jnp.sum(p, axis=-1, keepdims=True)                                     # softmax over m
        head_outs.append(jnp.dot(p, vh, preferred_element_type=jnp.float32))           # (N, dh)
    attn_out = head_outs[0] if num_heads == 1 else jnp.concatenate(head_outs, axis=-1)  # (N, C)

    proj = jnp.dot(attn_out, wp_ref[...], preferred_element_type=jnp.float32) + bp_ref[...]
    o_ref[...] = _layer_norm(proj + x, g_ref[...], beta_ref[...]).astype(o_ref.dtype)


def _time_mlp_block_kernel(x_ref, ctx_ref,
                           w1_ref, b1_ref, wg1_ref, bg1_ref, wb1_ref,
                           w2_ref, b2_ref, wg2_ref, bg2_ref, wb2_ref,
                           g_ref, beta_ref, o_ref):
    """TimeMLP (two ConcatSquashLinear layers, ReLU) + residual + LayerNorm per batch element."""
    x = x_ref[...]                       # (N, C)
    ctx = ctx_ref[...]                   # (1, Cctx)

    # ConcatSquashLinear #1: (x @ W1 + b1) * sigmoid(ctx @ Wg1 + bg1) + ctx @ Wb1
    h = jnp.dot(x, w1_ref[...], preferred_element_type=jnp.float32) + b1_ref[...]
    gate1 = jnp.dot(ctx, wg1_ref[...], preferred_element_type=jnp.float32) + bg1_ref[...]
    gate1 = 1.0 / (1.0 + jnp.exp(-gate1))
    h = h * gate1 + jnp.dot(ctx, wb1_ref[...], preferred_element_type=jnp.float32)
    h = jnp.maximum(h, 0.0)              # TimeMLP default act = relu

    # ConcatSquashLinear #2
    o = jnp.dot(h, w2_ref[...], preferred_element_type=jnp.float32) + b2_ref[...]
    gate2 = jnp.dot(ctx, wg2_ref[...], preferred_element_type=jnp.float32) + bg2_ref[...]
    gate2 = 1.0 / (1.0 + jnp.exp(-gate2))
    o = o * gate2 + jnp.dot(ctx, wb2_ref[...], preferred_element_type=jnp.float32)

    o_ref[...] = _layer_norm(o + x, g_ref[...], beta_ref[...]).astype(o_ref.dtype)


def _linear_kernel(x_ref, w_ref, b_ref, o_ref):
    o_ref[...] = (jnp.dot(x_ref[...], w_ref[...], preferred_element_type=jnp.float32)
                  + b_ref[...]).astype(o_ref.dtype)


# ----------------------------------------------------------------------------- wrappers

def attn_block(x, y, p, num_heads):
    B, N, C = x.shape
    _, M, Cr = y.shape
    scale = float((C // num_heads) ** -0.5)
    kernel = functools.partial(_attn_block_kernel, num_heads=num_heads, scale=scale)
    const = lambda b: (0, 0)             # weights: constant block index -> stay resident in VMEM
    return pl.pallas_call(
        kernel,
        out_shape=jax.ShapeDtypeStruct((B, N, C), x.dtype),
        grid=(B,),
        in_specs=[
            pl.BlockSpec((None, N, C), lambda b: (b, 0, 0)),    # x  (residual source)
            pl.BlockSpec((None, M, Cr), lambda b: (b, 0, 0)),   # y  (== x for self-attn)
            pl.BlockSpec((C, C), const),        # Wq
            pl.BlockSpec((1, C), const),        # bq
            pl.BlockSpec((Cr, 2 * C), const),   # Wkv
            pl.BlockSpec((1, 2 * C), const),    # bkv
            pl.BlockSpec((C, C), const),        # Wproj
            pl.BlockSpec((1, C), const),        # bproj
            pl.BlockSpec((1, C), const),        # LayerNorm gamma
            pl.BlockSpec((1, C), const),        # LayerNorm beta
        ],
        out_specs=pl.BlockSpec((None, N, C), lambda b: (b, 0, 0)),
        compiler_params=pltpu.CompilerParams(dimension_semantics=("parallel",)),
    )(x, y, p["wq"], p["bq"], p["wkv"], p["bkv"], p["wp"], p["bp"], p["ln_g"], p["ln_b"])


def time_mlp_block(x, ctx, p):
    B, N, C = x.shape
    _, _, Cctx = ctx.shape
    H = p["w1"].shape[1]
    const = lambda b: (0, 0)
    return pl.pallas_call(
        _time_mlp_block_kernel,
        out_shape=jax.ShapeDtypeStruct((B, N, C), x.dtype),
        grid=(B,),
        in_specs=[
            pl.BlockSpec((None, N, C), lambda b: (b, 0, 0)),    # x (residual source)
            pl.BlockSpec((None, 1, Cctx), lambda b: (b, 0, 0)), # ctx (time embedding)
            pl.BlockSpec((C, H), const),        # fc1 W
            pl.BlockSpec((1, H), const),        # fc1 b
            pl.BlockSpec((Cctx, H), const),     # fc1 hyper_gate W
            pl.BlockSpec((1, H), const),        # fc1 hyper_gate b
            pl.BlockSpec((Cctx, H), const),     # fc1 hyper_bias W (no bias)
            pl.BlockSpec((H, C), const),        # fc2 W
            pl.BlockSpec((1, C), const),        # fc2 b
            pl.BlockSpec((Cctx, C), const),     # fc2 hyper_gate W
            pl.BlockSpec((1, C), const),        # fc2 hyper_gate b
            pl.BlockSpec((Cctx, C), const),     # fc2 hyper_bias W
            pl.BlockSpec((1, C), const),        # LayerNorm gamma
            pl.BlockSpec((1, C), const),        # LayerNorm beta
        ],
        out_specs=pl.BlockSpec((None, N, C), lambda b: (b, 0, 0)),
        compiler_params=pltpu.CompilerParams(dimension_semantics=("parallel",)),
    )(x, ctx, p["w1"], p["b1"], p["wg1"], p["bg1"], p["wb1"],
      p["w2"], p["b2"], p["wg2"], p["bg2"], p["wb2"], p["ln_g"], p["ln_b"])


def final_linear(x, w, b):
    B, N, C = x.shape
    Dout = w.shape[1]
    x2d = x.reshape(B * N, C)            # lane/sublane-dense 2-D presentation (perf review)
    out = pl.pallas_call(
        _linear_kernel,
        out_shape=jax.ShapeDtypeStruct((B * N, Dout), x.dtype),
        grid=(1,),
        in_specs=[
            pl.BlockSpec((B * N, C), lambda i: (0, 0)),
            pl.BlockSpec((C, Dout), lambda i: (0, 0)),
            pl.BlockSpec((1, Dout), lambda i: (0, 0)),
        ],
        out_specs=pl.BlockSpec((B * N, Dout), lambda i: (0, 0)),
    )(x2d, w, b)
    return out.reshape(B, N, Dout)


def time_transformer_decoder(x, y, ctx, params, *, num_heads):
    """Forward pass of TimeTransformerDecoder (attention maps are discarded, as in the module)."""
    for lp in params["layers"]:
        x = attn_block(x, x, lp["attn"], num_heads)         # self-attn + residual + attn_norm
        x = attn_block(x, y, lp["cross_attn"], num_heads)   # cross-attn + residual + cross_attn_norm
        x = time_mlp_block(x, ctx, lp["mlp"])               # TimeMLP (ConcatSquash) + residual + norm
    if params["fc"] is not None:                            # last_fc=True
        x = final_linear(x, params["fc"]["w"], params["fc"]["b"])
    return x


# ----------------------------------------------------------------------------- params

def _linear_init(key, d_in, d_out, bias=True):
    s = 1.0 / float(np.sqrt(d_in))
    kw, kb = jax.random.split(key)
    w = jax.random.uniform(kw, (d_in, d_out), jnp.float32, minval=-s, maxval=s)
    if not bias:
        return w
    b = jax.random.uniform(kb, (1, d_out), jnp.float32, minval=-s, maxval=s)
    return w, b


def _ln_init(key, dim):
    kg, kb = jax.random.split(key)
    g = 1.0 + 0.1 * jax.random.normal(kg, (1, dim), jnp.float32)
    b = 0.1 * jax.random.normal(kb, (1, dim), jnp.float32)
    return g, b


def init_decoder_params(key, dim_self, dim_ref, dim_ctx, mlp_ratio, num_layers, last_fc_dim_out):
    dim_h = int(dim_self * int(mlp_ratio))
    layer_keys = jax.random.split(key, num_layers + 1)
    layers = []
    for li in range(num_layers):
        k = jax.random.split(layer_keys[li], 16)
        wq, bq = _linear_init(k[0], dim_self, dim_self)
        wkv, bkv = _linear_init(k[1], dim_self, 2 * dim_self)
        wp, bp = _linear_init(k[2], dim_self, dim_self)
        g_a, b_a = _ln_init(k[3], dim_self)
        attn = dict(wq=wq, bq=bq, wkv=wkv, bkv=bkv, wp=wp, bp=bp, ln_g=g_a, ln_b=b_a)

        cwq, cbq = _linear_init(k[4], dim_self, dim_self)
        cwkv, cbkv = _linear_init(k[5], dim_ref, 2 * dim_self)
        cwp, cbp = _linear_init(k[6], dim_self, dim_self)
        g_c, b_c = _ln_init(k[7], dim_self)
        cross = dict(wq=cwq, bq=cbq, wkv=cwkv, bkv=cbkv, wp=cwp, bp=cbp, ln_g=g_c, ln_b=b_c)

        w1, b1 = _linear_init(k[8], dim_self, dim_h)
        wg1, bg1 = _linear_init(k[9], dim_ctx, dim_h)
        wb1 = _linear_init(k[10], dim_ctx, dim_h, bias=False)
        w2, b2 = _linear_init(k[11], dim_h, dim_self)
        wg2, bg2 = _linear_init(k[12], dim_ctx, dim_self)
        wb2 = _linear_init(k[13], dim_ctx, dim_self, bias=False)
        g_m, b_m = _ln_init(k[14], dim_self)
        mlp = dict(w1=w1, b1=b1, wg1=wg1, bg1=bg1, wb1=wb1,
                   w2=w2, b2=b2, wg2=wg2, bg2=bg2, wb2=wb2, ln_g=g_m, ln_b=b_m)

        layers.append(dict(attn=attn, cross_attn=cross, mlp=mlp))

    fw, fb = _linear_init(layer_keys[num_layers], dim_self, last_fc_dim_out)
    return dict(layers=layers, fc=dict(w=fw, b=fb))


# ----------------------------------------------------------------------------- pure-JAX reference

def _ref_layer_norm(x, g, b):
    m = x.mean(axis=-1, keepdims=True)
    v = ((x - m) ** 2).mean(axis=-1, keepdims=True)
    return (x - m) / jnp.sqrt(v + LN_EPS) * g + b


def _ref_mha(x, y, p, num_heads):
    B, N, C = x.shape
    _, M, _ = y.shape
    dh = C // num_heads
    scale = dh ** (-0.5)
    q = (x @ p["wq"] + p["bq"]).reshape(B, N, num_heads, dh)
    kv = y @ p["wkv"] + p["bkv"]
    k = kv[..., :C].reshape(B, M, num_heads, dh)
    v = kv[..., C:].reshape(B, M, num_heads, dh)
    att = jnp.einsum("bnhd,bmhd->bnmh", q, k) * scale
    att = jax.nn.softmax(att, axis=2)
    out = jnp.einsum("bnmh,bmhd->bnhd", att, v).reshape(B, N, C)
    return out @ p["wp"] + p["bp"]


def _ref_concat_squash(x, ctx, w, b, wg, bg, wb):
    gate = jax.nn.sigmoid(ctx @ wg + bg)
    return (x @ w + b) * gate + ctx @ wb


def reference_forward(x, y, ctx, params, num_heads):
    for lp in params["layers"]:
        res = x
        x = _ref_layer_norm(_ref_mha(x, x, lp["attn"], num_heads) + res,
                            lp["attn"]["ln_g"], lp["attn"]["ln_b"])
        res = x
        x = _ref_layer_norm(_ref_mha(x, y, lp["cross_attn"], num_heads) + res,
                            lp["cross_attn"]["ln_g"], lp["cross_attn"]["ln_b"])
        res = x
        m = lp["mlp"]
        h = _ref_concat_squash(x, ctx, m["w1"], m["b1"], m["wg1"], m["bg1"], m["wb1"])
        h = jnp.maximum(h, 0.0)
        h = _ref_concat_squash(h, ctx, m["w2"], m["b2"], m["wg2"], m["bg2"], m["wb2"])
        x = _ref_layer_norm(h + res, m["ln_g"], m["ln_b"])
    return x @ params["fc"]["w"] + params["fc"]["b"]


# ----------------------------------------------------------------------------- main

if __name__ == "__main__":
    B, N, M = 2, 8, 16
    dim_self, dim_ref, dim_ctx = 32, 64, 8
    num_heads = 4
    mlp_ratio = 2.0
    num_layers = 3
    last_fc_dim_out = 16

    root = jax.random.PRNGKey(0)
    kx, ky, kc, kp = jax.random.split(root, 4)
    x = jax.random.normal(kx, (B, N, dim_self), dtype=jnp.float32)
    y = jax.random.normal(ky, (B, M, dim_ref), dtype=jnp.float32)
    ctx = jax.random.normal(kc, (B, 1, dim_ctx), dtype=jnp.float32)

    params = init_decoder_params(kp, dim_self, dim_ref, dim_ctx,
                                 mlp_ratio, num_layers, last_fc_dim_out)

    fwd = jax.jit(functools.partial(time_transformer_decoder, num_heads=num_heads))
    out = jax.block_until_ready(fwd(x, y, ctx, params))

    ref = jax.block_until_ready(reference_forward(x, y, ctx, params, num_heads))

    assert out.shape == (B, N, last_fc_dim_out)
    assert out.dtype == jnp.float32
    np.testing.assert_allclose(np.asarray(out), np.asarray(ref), rtol=5e-2, atol=5e-2)

    print("KERNEL_OK")
</pallas_src>

<mosaic_0001>
module attributes {stable_mosaic.version = 11 : i64} {
  func.func @_time_mlp_block_kernel(%arg0: i32, %arg1: memref<1x8x32xf32, #tpu.memory_space<vmem>>, %arg2: memref<1x1x8xf32, #tpu.memory_space<vmem>>, %arg3: memref<32x64xf32, #tpu.memory_space<vmem>>, %arg4: memref<1x64xf32, #tpu.memory_space<vmem>>, %arg5: memref<8x64xf32, #tpu.memory_space<vmem>>, %arg6: memref<1x64xf32, #tpu.memory_space<vmem>>, %arg7: memref<8x64xf32, #tpu.memory_space<vmem>>, %arg8: memref<64x32xf32, #tpu.memory_space<vmem>>, %arg9: memref<1x32xf32, #tpu.memory_space<vmem>>, %arg10: memref<8x32xf32, #tpu.memory_space<vmem>>, %arg11: memref<1x32xf32, #tpu.memory_space<vmem>>, %arg12: memref<8x32xf32, #tpu.memory_space<vmem>>, %arg13: memref<1x32xf32, #tpu.memory_space<vmem>>, %arg14: memref<1x32xf32, #tpu.memory_space<vmem>>, %arg15: memref<1x8x32xf32, #tpu.memory_space<vmem>>) attributes {dimension_semantics = [#tpu.dimension_semantics<parallel>], iteration_bounds = array<i64: 2>, scalar_prefetch = 0 : i64, scratch_operands = 0 : i64, tpu.core_type = #tpu.core_type<tc>, window_params = [{transform_indices = @transform_0, window_bounds = array<i64: 1, 8, 32>}, {transform_indices = @transform_1, window_bounds = array<i64: 1, 1, 8>}, {pipeline_mode = #tpu.pipeline_mode<synchronous>, transform_indices = @transform_2, window_bounds = array<i64: 32, 64>}, {pipeline_mode = #tpu.pipeline_mode<synchronous>, transform_indices = @transform_3, window_bounds = array<i64: 1, 64>}, {pipeline_mode = #tpu.pipeline_mode<synchronous>, transform_indices = @transform_4, window_bounds = array<i64: 8, 64>}, {pipeline_mode = #tpu.pipeline_mode<synchronous>, transform_indices = @transform_5, window_bounds = array<i64: 1, 64>}, {pipeline_mode = #tpu.pipeline_mode<synchronous>, transform_indices = @transform_6, window_bounds = array<i64: 8, 64>}, {pipeline_mode = #tpu.pipeline_mode<synchronous>, transform_indices = @transform_7, window_bounds = array<i64: 64, 32>}, {pipeline_mode = #tpu.pipeline_mode<synchronous>, transform_indices = @transform_8, window_bounds = array<i64: 1, 32>}, {pipeline_mode = #tpu.pipeline_mode<synchronous>, transform_indices = @transform_9, window_bounds = array<i64: 8, 32>}, {pipeline_mode = #tpu.pipeline_mode<synchronous>, transform_indices = @transform_10, window_bounds = array<i64: 1, 32>}, {pipeline_mode = #tpu.pipeline_mode<synchronous>, transform_indices = @transform_11, window_bounds = array<i64: 8, 32>}, {pipeline_mode = #tpu.pipeline_mode<synchronous>, transform_indices = @transform_12, window_bounds = array<i64: 1, 32>}, {pipeline_mode = #tpu.pipeline_mode<synchronous>, transform_indices = @transform_13, window_bounds = array<i64: 1, 32>}, {transform_indices = @transform_14, window_bounds = array<i64: 1, 8, 32>}]} {
    %c0 = arith.constant 0 : index
    %c0_0 = arith.constant 0 : index
    %c0_1 = arith.constant 0 : index
    %0 = vector.load %arg1[%c0, %c0_0, %c0_1] : memref<1x8x32xf32, #tpu.memory_space<vmem>>, vector<1x8x32xf32>
    %1 = vector.shape_cast %0 : vector<1x8x32xf32> to vector<8x32xf32>
    %c0_2 = arith.constant 0 : index
    %c0_3 = arith.constant 0 : index
    %c0_4 = arith.constant 0 : index
    %2 = vector.load %arg2[%c0_2, %c0_3, %c0_4] : memref<1x1x8xf32, #tpu.memory_space<vmem>>, vector<1x1x8xf32>
    %3 = vector.shape_cast %2 : vector<1x1x8xf32> to vector<1x8xf32>
    %c0_5 = arith.constant 0 : index
    %c0_6 = arith.constant 0 : index
    %4 = vector.load %arg3[%c0_5, %c0_6] : memref<32x64xf32, #tpu.memory_space<vmem>>, vector<32x64xf32>
    %cst = arith.constant dense<0.000000e+00> : vector<8x64xf32>
    %5 = tpu.matmul %1, %4, %cst {dimension_numbers = #tpu.dot_dimension_numbers<[1], [0], [0], [1], [0, 0, 1, 1], [], []>} : vector<8x32xf32>, vector<32x64xf32>, vector<8x64xf32> -> vector<8x64xf32>
    %c0_7 = arith.constant 0 : index
    %c0_8 = arith.constant 0 : index
    %6 = vector.load %arg4[%c0_7, %c0_8] : memref<1x64xf32, #tpu.memory_space<vmem>>, vector<1x64xf32>
    %7 = vector.broadcast %6 : vector<1x64xf32> to vector<8x64xf32>
    %8 = arith.addf %5, %7 : vector<8x64xf32>
    %c0_9 = arith.constant 0 : index
    %c0_10 = arith.constant 0 : index
    %9 = vector.load %arg5[%c0_9, %c0_10] : memref<8x64xf32, #tpu.memory_space<vmem>>, vector<8x64xf32>
    %cst_11 = arith.constant dense<0.000000e+00> : vector<1x64xf32>
    %10 = tpu.matmul %3, %9, %cst_11 {dimension_numbers = #tpu.dot_dimension_numbers<[1], [0], [0], [1], [0, 0, 1, 1], [], []>} : vector<1x8xf32>, vector<8x64xf32>, vector<1x64xf32> -> vector<1x64xf32>
    %c0_12 = arith.constant 0 : index
    %c0_13 = arith.constant 0 : index
    %11 = vector.load %arg6[%c0_12, %c0_13] : memref<1x64xf32, #tpu.memory_space<vmem>>, vector<1x64xf32>
    %12 = arith.addf %10, %11 : vector<1x64xf32>
    %cst_14 = arith.constant 0.000000e+00 : f32
    %13 = vector.broadcast %cst_14 : f32 to vector<1x64xf32>
    %14 = arith.subf %13, %12 : vector<1x64xf32>
    %15 = math.exp %14 : vector<1x64xf32>
    %cst_15 = arith.constant 1.000000e+00 : f32
    %16 = vector.broadcast %cst_15 : f32 to vector<1x64xf32>
    %17 = arith.addf %16, %15 : vector<1x64xf32>
    %cst_16 = arith.constant 1.000000e+00 : f32
    %18 = vector.broadcast %cst_16 : f32 to vector<1x64xf32>
    %19 = arith.divf %18, %17 : vector<1x64xf32>
    %20 = vector.broadcast %19 : vector<1x64xf32> to vector<8x64xf32>
    %21 = arith.mulf %8, %20 : vector<8x64xf32>
    %c0_17 = arith.constant 0 : index
    %c0_18 = arith.constant 0 : index
    %22 = vector.load %arg7[%c0_17, %c0_18] : memref<8x64xf32, #tpu.memory_space<vmem>>, vector<8x64xf32>
    %cst_19 = arith.constant dense<0.000000e+00> : vector<1x64xf32>
    %23 = tpu.matmul %3, %22, %cst_19 {dimension_numbers = #tpu.dot_dimension_numbers<[1], [0], [0], [1], [0, 0, 1, 1], [], []>} : vector<1x8xf32>, vector<8x64xf32>, vector<1x64xf32> -> vector<1x64xf32>
    %24 = vector.broadcast %23 : vector<1x64xf32> to vector<8x64xf32>
    %25 = arith.addf %21, %24 : vector<8x64xf32>
    %cst_20 = arith.constant 0.000000e+00 : f32
    %26 = vector.broadcast %cst_20 : f32 to vector<8x64xf32>
    %27 = arith.maximumf %25, %26 : vector<8x64xf32>
    %c0_21 = arith.constant 0 : index
    %c0_22 = arith.constant 0 : index
    %28 = vector.load %arg8[%c0_21, %c0_22] : memref<64x32xf32, #tpu.memory_space<vmem>>, vector<64x32xf32>
    %cst_23 = arith.constant dense<0.000000e+00> : vector<8x32xf32>
    %29 = tpu.matmul %27, %28, %cst_23 {dimension_numbers = #tpu.dot_dimension_numbers<[1], [0], [0], [1], [0, 0, 1, 1], [], []>} : vector<8x64xf32>, vector<64x32xf32>, vector<8x32xf32> -> vector<8x32xf32>
    %c0_24 = arith.constant 0 : index
    %c0_25 = arith.constant 0 : index
    %30 = vector.load %arg9[%c0_24, %c0_25] : memref<1x32xf32, #tpu.memory_space<vmem>>, vector<1x32xf32>
    %31 = vector.broadcast %30 : vector<1x32xf32> to vector<8x32xf32>
    %32 = arith.addf %29, %31 : vector<8x32xf32>
    %c0_26 = arith.constant 0 : index
    %c0_27 = arith.constant 0 : index
    %33 = vector.load %arg10[%c0_26, %c0_27] : memref<8x32xf32, #tpu.memory_space<vmem>>, vector<8x32xf32>
    %cst_28 = arith.constant dense<0.000000e+00> : vector<1x32xf32>
    %34 = tpu.matmul %3, %33, %cst_28 {dimension_numbers = #tpu.dot_dimension_numbers<[1], [0], [0], [1], [0, 0, 1, 1], [], []>} : vector<1x8xf32>, vector<8x32xf32>, vector<1x32xf32> -> vector<1x32xf32>
    %c0_29 = arith.constant 0 : index
    %c0_30 = arith.constant 0 : index
    %35 = vector.load %arg11[%c0_29, %c0_30] : memref<1x32xf32, #tpu.memory_space<vmem>>, vector<1x32xf32>
    %36 = arith.addf %34, %35 : vector<1x32xf32>
    %cst_31 = arith.constant 0.000000e+00 : f32
    %37 = vector.broadcast %cst_31 : f32 to vector<1x32xf32>
    %38 = arith.subf %37, %36 : vector<1x32xf32>
    %39 = math.exp %38 : vector<1x32xf32>
    %cst_32 = arith.constant 1.000000e+00 : f32
    %40 = vector.broadcast %cst_32 : f32 to vector<1x32xf32>
    %41 = arith.addf %40, %39 : vector<1x32xf32>
    %cst_33 = arith.constant 1.000000e+00 : f32
    %42 = vector.broadcast %cst_33 : f32 to vector<1x32xf32>
    %43 = arith.divf %42, %41 : vector<1x32xf32>
    %44 = vector.broadcast %43 : vector<1x32xf32> to vector<8x32xf32>
    %45 = arith.mulf %32, %44 : vector<8x32xf32>
    %c0_34 = arith.constant 0 : index
    %c0_35 = arith.constant 0 : index
    %46 = vector.load %arg12[%c0_34, %c0_35] : memref<8x32xf32, #tpu.memory_space<vmem>>, vector<8x32xf32>
    %cst_36 = arith.constant dense<0.000000e+00> : vector<1x32xf32>
    %47 = tpu.matmul %3, %46, %cst_36 {dimension_numbers = #tpu.dot_dimension_numbers<[1], [0], [0], [1], [0, 0, 1, 1], [], []>} : vector<1x8xf32>, vector<8x32xf32>, vector<1x32xf32> -> vector<1x32xf32>
    %48 = vector.broadcast %47 : vector<1x32xf32> to vector<8x32xf32>
    %49 = arith.addf %45, %48 : vector<8x32xf32>
    %50 = arith.addf %49, %1 : vector<8x32xf32>
    %c0_37 = arith.constant 0 : index
    %c0_38 = arith.constant 0 : index
    %51 = vector.load %arg13[%c0_37, %c0_38] : memref<1x32xf32, #tpu.memory_space<vmem>>, vector<1x32xf32>
    %c0_39 = arith.constant 0 : index
    %c0_40 = arith.constant 0 : index
    %52 = vector.load %arg14[%c0_39, %c0_40] : memref<1x32xf32, #tpu.memory_space<vmem>>, vector<1x32xf32>
    %cst_41 = arith.constant dense<0.000000e+00> : vector<8xf32>
    %53 = vector.multi_reduction <add>, %50, %cst_41 [1] : vector<8x32xf32> to vector<8xf32>
    %54 = vector.shape_cast %53 : vector<8xf32> to vector<8x1xf32>
    %cst_42 = arith.constant 3.200000e+01 : f32
    %55 = vector.broadcast %cst_42 : f32 to vector<8x1xf32>
    %56 = arith.divf %54, %55 : vector<8x1xf32>
    %57 = vector.broadcast %56 : vector<8x1xf32> to vector<8x32xf32>
    %58 = arith.subf %50, %57 : vector<8x32xf32>
    %59 = vector.broadcast %56 : vector<8x1xf32> to vector<8x32xf32>
    %60 = arith.subf %50, %59 : vector<8x32xf32>
    %61 = arith.mulf %58, %60 : vector<8x32xf32>
    %cst_43 = arith.constant dense<0.000000e+00> : vector<8xf32>
    %62 = vector.multi_reduction <add>, %61, %cst_43 [1] : vector<8x32xf32> to vector<8xf32>
    %63 = vector.shape_cast %62 : vector<8xf32> to vector<8x1xf32>
    %cst_44 = arith.constant 3.200000e+01 : f32
    %64 = vector.broadcast %cst_44 : f32 to vector<8x1xf32>
    %65 = arith.divf %63, %64 : vector<8x1xf32>
    %66 = vector.broadcast %56 : vector<8x1xf32> to vector<8x32xf32>
    %67 = arith.subf %50, %66 : vector<8x32xf32>
    %cst_45 = arith.constant 9.99999974E-6 : f32
    %68 = vector.broadcast %cst_45 : f32 to vector<8x1xf32>
    %69 = arith.addf %65, %68 : vector<8x1xf32>
    %70 = math.rsqrt %69 : vector<8x1xf32>
    %71 = vector.broadcast %70 : vector<8x1xf32> to vector<8x32xf32>
    %72 = arith.mulf %67, %71 : vector<8x32xf32>
    %73 = vector.broadcast %51 : vector<1x32xf32> to vector<8x32xf32>
    %74 = arith.mulf %72, %73 : vector<8x32xf32>
    %75 = vector.broadcast %52 : vector<1x32xf32> to vector<8x32xf32>
    %76 = arith.addf %74, %75 : vector<8x32xf32>
    %c0_46 = arith.constant 0 : index
    %c0_47 = arith.constant 0 : index
    %c0_48 = arith.constant 0 : index
    %77 = vector.load %arg15[%c0_46, %c0_47, %c0_48] : memref<1x8x32xf32, #tpu.memory_space<vmem>>, vector<1x8x32xf32>
    %78 = vector.shape_cast %77 : vector<1x8x32xf32> to vector<8x32xf32>
    %79 = vector.shape_cast %76 : vector<8x32xf32> to vector<1x8x32xf32>
    tpu.vector_store %arg15[%c0_46, %c0_47, %c0_48], %79 {strides = array<i32>} : memref<1x8x32xf32, #tpu.memory_space<vmem>>, vector<1x8x32xf32>,
    return
  }
  func.func @transform_0(%arg0: i32) -> (i32, i32, i32) {
    %c0_i32 = arith.constant 0 : i32
    %c0_i32_0 = arith.constant 0 : i32
    %c0_i32_1 = arith.constant 0 : i32
    return %arg0, %c0_i32, %c0_i32_0 : i32, i32, i32
  }
  func.func @transform_1(%arg0: i32) -> (i32, i32, i32) {
    %c0_i32 = arith.constant 0 : i32
    %c0_i32_0 = arith.constant 0 : i32
    %c0_i32_1 = arith.constant 0 : i32
    return %arg0, %c0_i32, %c0_i32_0 : i32, i32, i32
  }
  func.func @transform_2(%arg0: i32) -> (i32, i32) {
    %c0_i32 = arith.constant 0 : i32
    %c0_i32_0 = arith.constant 0 : i32
    %c0_i32_1 = arith.constant 0 : i32
    return %c0_i32, %c0_i32_0 : i32, i32
  }
  func.func @transform_3(%arg0: i32) -> (i32, i32) {
    %c0_i32 = arith.constant 0 : i32
    %c0_i32_0 = arith.constant 0 : i32
    %c0_i32_1 = arith.constant 0 : i32
    return %c0_i32, %c0_i32_0 : i32, i32
  }
  func.func @transform_4(%arg0: i32) -> (i32, i32) {
    %c0_i32 = arith.constant 0 : i32
    %c0_i32_0 = arith.constant 0 : i32
    %c0_i32_1 = arith.constant 0 : i32
    return %c0_i32, %c0_i32_0 : i32, i32
  }
  func.func @transform_5(%arg0: i32) -> (i32, i32) {
    %c0_i32 = arith.constant 0 : i32
    %c0_i32_0 = arith.constant 0 : i32
    %c0_i32_1 = arith.constant 0 : i32
    return %c0_i32, %c0_i32_0 : i32, i32
  }
  func.func @transform_6(%arg0: i32) -> (i32, i32) {
    %c0_i32 = arith.constant 0 : i32
    %c0_i32_0 = arith.constant 0 : i32
    %c0_i32_1 = arith.constant 0 : i32
    return %c0_i32, %c0_i32_0 : i32, i32
  }
  func.func @transform_7(%arg0: i32) -> (i32, i32) {
    %c0_i32 = arith.constant 0 : i32
    %c0_i32_0 = arith.constant 0 : i32
    %c0_i32_1 = arith.constant 0 : i32
    return %c0_i32, %c0_i32_0 : i32, i32
  }
  func.func @transform_8(%arg0: i32) -> (i32, i32) {
    %c0_i32 = arith.constant 0 : i32
    %c0_i32_0 = arith.constant 0 : i32
    %c0_i32_1 = arith.constant 0 : i32
    return %c0_i32, %c0_i32_0 : i32, i32
  }
  func.func @transform_9(%arg0: i32) -> (i32, i32) {
    %c0_i32 = arith.constant 0 : i32
    %c0_i32_0 = arith.constant 0 : i32
    %c0_i32_1 = arith.constant 0 : i32
    return %c0_i32, %c0_i32_0 : i32, i32
  }
  func.func @transform_10(%arg0: i32) -> (i32, i32) {
    %c0_i32 = arith.constant 0 : i32
    %c0_i32_0 = arith.constant 0 : i32
    %c0_i32_1 = arith.constant 0 : i32
    return %c0_i32, %c0_i32_0 : i32, i32
  }
  func.func @transform_11(%arg0: i32) -> (i32, i32) {
    %c0_i32 = arith.constant 0 : i32
    %c0_i32_0 = arith.constant 0 : i32
    %c0_i32_1 = arith.constant 0 : i32
    return %c0_i32, %c0_i32_0 : i32, i32
  }
  func.func @transform_12(%arg0: i32) -> (i32, i32) {
    %c0_i32 = arith.constant 0 : i32
    %c0_i32_0 = arith.constant 0 : i32
    %c0_i32_1 = arith.constant 0 : i32
    return %c0_i32, %c0_i32_0 : i32, i32
  }
  func.func @transform_13(%arg0: i32) -> (i32, i32) {
    %c0_i32 = arith.constant 0 : i32
    %c0_i32_0 = arith.constant 0 : i32
    %c0_i32_1 = arith.constant 0 : i32
    return %c0_i32, %c0_i32_0 : i32, i32
  }
  func.func @transform_14(%arg0: i32) -> (i32, i32, i32) {
    %c0_i32 = arith.constant 0 : i32
    %c0_i32_0 = arith.constant 0 : i32
    %c0_i32_1 = arith.constant 0 : i32
    return %arg0, %c0_i32, %c0_i32_0 : i32, i32, i32
  }
}

module attributes {stable_mosaic.version = 11 : i64} {
  func.func @_attn_block_kernel(%arg0: i32, %arg1: memref<1x8x32xf32, #tpu.memory_space<vmem>>, %arg2: memref<1x8x32xf32, #tpu.memory_space<vmem>>, %arg3: memref<32x32xf32, #tpu.memory_space<vmem>>, %arg4: memref<1x32xf32, #tpu.memory_space<vmem>>, %arg5: memref<32x64xf32, #tpu.memory_space<vmem>>, %arg6: memref<1x64xf32, #tpu.memory_space<vmem>>, %arg7: memref<32x32xf32, #tpu.memory_space<vmem>>, %arg8: memref<1x32xf32, #tpu.memory_space<vmem>>, %arg9: memref<1x32xf32, #tpu.memory_space<vmem>>, %arg10: memref<1x32xf32, #tpu.memory_space<vmem>>, %arg11: memref<1x8x32xf32, #tpu.memory_space<vmem>>) attributes {dimension_semantics = [#tpu.dimension_semantics<parallel>], iteration_bounds = array<i64: 2>, scalar_prefetch = 0 : i64, scratch_operands = 0 : i64, tpu.core_type = #tpu.core_type<tc>, window_params = [{transform_indices = @transform_0, window_bounds = array<i64: 1, 8, 32>}, {transform_indices = @transform_1, window_bounds = array<i64: 1, 8, 32>}, {pipeline_mode = #tpu.pipeline_mode<synchronous>, transform_indices = @transform_2, window_bounds = array<i64: 32, 32>}, {pipeline_mode = #tpu.pipeline_mode<synchronous>, transform_indices = @transform_3, window_bounds = array<i64: 1, 32>}, {pipeline_mode = #tpu.pipeline_mode<synchronous>, transform_indices = @transform_4, window_bounds = array<i64: 32, 64>}, {pipeline_mode = #tpu.pipeline_mode<synchronous>, transform_indices = @transform_5, window_bounds = array<i64: 1, 64>}, {pipeline_mode = #tpu.pipeline_mode<synchronous>, transform_indices = @transform_6, window_bounds = array<i64: 32, 32>}, {pipeline_mode = #tpu.pipeline_mode<synchronous>, transform_indices = @transform_7, window_bounds = array<i64: 1, 32>}, {pipeline_mode = #tpu.pipeline_mode<synchronous>, transform_indices = @transform_8, window_bounds = array<i64: 1, 32>}, {pipeline_mode = #tpu.pipeline_mode<synchronous>, transform_indices = @transform_9, window_bounds = array<i64: 1, 32>}, {transform_indices = @transform_10, window_bounds = array<i64: 1, 8, 32>}]} {
    %c0 = arith.constant 0 : index
    %c0_0 = arith.constant 0 : index
    %c0_1 = arith.constant 0 : index
    %0 = vector.load %arg1[%c0, %c0_0, %c0_1] : memref<1x8x32xf32, #tpu.memory_space<vmem>>, vector<1x8x32xf32>
    %1 = vector.shape_cast %0 : vector<1x8x32xf32> to vector<8x32xf32>
    %c0_2 = arith.constant 0 : index
    %c0_3 = arith.constant 0 : index
    %c0_4 = arith.constant 0 : index
    %2 = vector.load %arg2[%c0_2, %c0_3, %c0_4] : memref<1x8x32xf32, #tpu.memory_space<vmem>>, vector<1x8x32xf32>
    %3 = vector.shape_cast %2 : vector<1x8x32xf32> to vector<8x32xf32>
    %c0_5 = arith.constant 0 : index
    %c0_6 = arith.constant 0 : index
    %4 = vector.load %arg3[%c0_5, %c0_6] : memref<32x32xf32, #tpu.memory_space<vmem>>, vector<32x32xf32>
    %cst = arith.constant dense<0.000000e+00> : vector<8x32xf32>
    %5 = tpu.matmul %1, %4, %cst {dimension_numbers = #tpu.dot_dimension_numbers<[1], [0], [0], [1], [0, 0, 1, 1], [], []>} : vector<8x32xf32>, vector<32x32xf32>, vector<8x32xf32> -> vector<8x32xf32>
    %c0_7 = arith.constant 0 : index
    %c0_8 = arith.constant 0 : index
    %6 = vector.load %arg4[%c0_7, %c0_8] : memref<1x32xf32, #tpu.memory_space<vmem>>, vector<1x32xf32>
    %7 = vector.broadcast %6 : vector<1x32xf32> to vector<8x32xf32>
    %8 = arith.addf %5, %7 : vector<8x32xf32>
    %c0_9 = arith.constant 0 : index
    %c0_10 = arith.constant 0 : index
    %9 = vector.load %arg5[%c0_9, %c0_10] : memref<32x64xf32, #tpu.memory_space<vmem>>, vector<32x64xf32>
    %cst_11 = arith.constant dense<0.000000e+00> : vector<8x64xf32>
    %10 = tpu.matmul %3, %9, %cst_11 {dimension_numbers = #tpu.dot_dimension_numbers<[1], [0], [0], [1], [0, 0, 1, 1], [], []>} : vector<8x32xf32>, vector<32x64xf32>, vector<8x64xf32> -> vector<8x64xf32>
    %c0_12 = arith.constant 0 : index
    %c0_13 = arith.constant 0 : index
    %11 = vector.load %arg6[%c0_12, %c0_13] : memref<1x64xf32, #tpu.memory_space<vmem>>, vector<1x64xf32>
    %12 = vector.broadcast %11 : vector<1x64xf32> to vector<8x64xf32>
    %13 = arith.addf %10, %12 : vector<8x64xf32>
    %14 = vector.extract_strided_slice %13 {offsets = [0, 0], sizes = [8, 32], strides = [1, 1]} : vector<8x64xf32> to vector<8x32xf32>
    %15 = vector.extract_strided_slice %13 {offsets = [0, 32], sizes = [8, 32], strides = [1, 1]} : vector<8x64xf32> to vector<8x32xf32>
    %16 = vector.extract_strided_slice %8 {offsets = [0, 0], sizes = [8, 8], strides = [1, 1]} : vector<8x32xf32> to vector<8x8xf32>
    %17 = vector.extract_strided_slice %14 {offsets = [0, 0], sizes = [8, 8], strides = [1, 1]} : vector<8x32xf32> to vector<8x8xf32>
    %18 = vector.extract_strided_slice %15 {offsets = [0, 0], sizes = [8, 8], strides = [1, 1]} : vector<8x32xf32> to vector<8x8xf32>
    %cst_14 = arith.constant dense<0.000000e+00> : vector<8x8xf32>
    %19 = tpu.matmul %16, %17, %cst_14 {dimension_numbers = #tpu.dot_dimension_numbers<[1], [1], [0], [0], [0, 0, 1, 0], [], []>} : vector<8x8xf32>, vector<8x8xf32>, vector<8x8xf32> -> vector<8x8xf32>
    %cst_15 = arith.constant 0.353553385 : f32
    %20 = vector.broadcast %cst_15 : f32 to vector<8x8xf32>
    %21 = arith.mulf %19, %20 : vector<8x8xf32>
    %cst_16 = arith.constant dense<0xFF800000> : vector<8xf32>
    %22 = vector.multi_reduction <maximumf>, %21, %cst_16 [1] : vector<8x8xf32> to vector<8xf32>
    %23 = vector.shape_cast %22 : vector<8xf32> to vector<8x1xf32>
    %24 = vector.broadcast %23 : vector<8x1xf32> to vector<8x8xf32>
    %25 = arith.subf %21, %24 : vector<8x8xf32>
    %26 = math.exp %25 : vector<8x8xf32>
    %cst_17 = arith.constant dense<0.000000e+00> : vector<8xf32>
    %27 = vector.multi_reduction <add>, %26, %cst_17 [1] : vector<8x8xf32> to vector<8xf32>
    %28 = vector.shape_cast %27 : vector<8xf32> to vector<8x1xf32>
    %29 = vector.broadcast %28 : vector<8x1xf32> to vector<8x8xf32>
    %30 = arith.divf %26, %29 : vector<8x8xf32>
    %cst_18 = arith.constant dense<0.000000e+00> : vector<8x8xf32>
    %31 = tpu.matmul %30, %18, %cst_18 {dimension_numbers = #tpu.dot_dimension_numbers<[1], [0], [0], [1], [0, 0, 1, 1], [], []>} : vector<8x8xf32>, vector<8x8xf32>, vector<8x8xf32> -> vector<8x8xf32>
    %32 = vector.extract_strided_slice %8 {offsets = [0, 8], sizes = [8, 8], strides = [1, 1]} : vector<8x32xf32> to vector<8x8xf32>
    %33 = vector.extract_strided_slice %14 {offsets = [0, 8], sizes = [8, 8], strides = [1, 1]} : vector<8x32xf32> to vector<8x8xf32>
    %34 = vector.extract_strided_slice %15 {offsets = [0, 8], sizes = [8, 8], strides = [1, 1]} : vector<8x32xf32> to vector<8x8xf32>
    %cst_19 = arith.constant dense<0.000000e+00> : vector<8x8xf32>
    %35 = tpu.matmul %32, %33, %cst_19 {dimension_numbers = #tpu.dot_dimension_numbers<[1], [1], [0], [0], [0, 0, 1, 0], [], []>} : vector<8x8xf32>, vector<8x8xf32>, vector<8x8xf32> -> vector<8x8xf32>
    %cst_20 = arith.constant 0.353553385 : f32
    %36 = vector.broadcast %cst_20 : f32 to vector<8x8xf32>
    %37 = arith.mulf %35, %36 : vector<8x8xf32>
    %cst_21 = arith.constant dense<0xFF800000> : vector<8xf32>
    %38 = vector.multi_reduction <maximumf>, %37, %cst_21 [1] : vector<8x8xf32> to vector<8xf32>
    %39 = vector.shape_cast %38 : vector<8xf32> to vector<8x1xf32>
    %40 = vector.broadcast %39 : vector<8x1xf32> to vector<8x8xf32>
    %41 = arith.subf %37, %40 : vector<8x8xf32>
    %42 = math.exp %41 : vector<8x8xf32>
    %cst_22 = arith.constant dense<0.000000e+00> : vector<8xf32>
    %43 = vector.multi_reduction <add>, %42, %cst_22 [1] : vector<8x8xf32> to vector<8xf32>
    %44 = vector.shape_cast %43 : vector<8xf32> to vector<8x1xf32>
    %45 = vector.broadcast %44 : vector<8x1xf32> to vector<8x8xf32>
    %46 = arith.divf %42, %45 : vector<8x8xf32>
    %cst_23 = arith.constant dense<0.000000e+00> : vector<8x8xf32>
    %47 = tpu.matmul %46, %34, %cst_23 {dimension_numbers = #tpu.dot_dimension_numbers<[1], [0], [0], [1], [0, 0, 1, 1], [], []>} : vector<8x8xf32>, vector<8x8xf32>, vector<8x8xf32> -> vector<8x8xf32>
    %48 = vector.extract_strided_slice %8 {offsets = [0, 16], sizes = [8, 8], strides = [1, 1]} : vector<8x32xf32> to vector<8x8xf32>
    %49 = vector.extract_strided_slice %14 {offsets = [0, 16], sizes = [8, 8], strides = [1, 1]} : vector<8x32xf32> to vector<8x8xf32>
    %50 = vector.extract_strided_slice %15 {offsets = [0, 16], sizes = [8, 8], strides = [1, 1]} : vector<8x32xf32> to vector<8x8xf32>
    %cst_24 = arith.constant dense<0.000000e+00> : vector<8x8xf32>
    %51 = tpu.matmul %48, %49, %cst_24 {dimension_numbers = #tpu.dot_dimension_numbers<[1], [1], [0], [0], [0, 0, 1, 0], [], []>} : vector<8x8xf32>, vector<8x8xf32>, vector<8x8xf32> -> vector<8x8xf32>
    %cst_25 = arith.constant 0.353553385 : f32
    %52 = vector.broadcast %cst_25 : f32 to vector<8x8xf32>
    %53 = arith.mulf %51, %52 : vector<8x8xf32>
    %cst_26 = arith.constant dense<0xFF800000> : vector<8xf32>
    %54 = vector.multi_reduction <maximumf>, %53, %cst_26 [1] : vector<8x8xf32> to vector<8xf32>
    %55 = vector.shape_cast %54 : vector<8xf32> to vector<8x1xf32>
    %56 = vector.broadcast %55 : vector<8x1xf32> to vector<8x8xf32>
    %57 = arith.subf %53, %56 : vector<8x8xf32>
    %58 = math.exp %57 : vector<8x8xf32>
    %cst_27 = arith.constant dense<0.000000e+00> : vector<8xf32>
    %59 = vector.multi_reduction <add>, %58, %cst_27 [1] : vector<8x8xf32> to vector<8xf32>
    %60 = vector.shape_cast %59 : vector<8xf32> to vector<8x1xf32>
    %61 = vector.broadcast %60 : vector<8x1xf32> to vector<8x8xf32>
    %62 = arith.divf %58, %61 : vector<8x8xf32>
    %cst_28 = arith.constant dense<0.000000e+00> : vector<8x8xf32>
    %63 = tpu.matmul %62, %50, %cst_28 {dimension_numbers = #tpu.dot_dimension_numbers<[1], [0], [0], [1], [0, 0, 1, 1], [], []>} : vector<8x8xf32>, vector<8x8xf32>, vector<8x8xf32> -> vector<8x8xf32>
    %64 = vector.extract_strided_slice %8 {offsets = [0, 24], sizes = [8, 8], strides = [1, 1]} : vector<8x32xf32> to vector<8x8xf32>
    %65 = vector.extract_strided_slice %14 {offsets = [0, 24], sizes = [8, 8], strides = [1, 1]} : vector<8x32xf32> to vector<8x8xf32>
    %66 = vector.extract_strided_slice %15 {offsets = [0, 24], sizes = [8, 8], strides = [1, 1]} : vector<8x32xf32> to vector<8x8xf32>
    %cst_29 = arith.constant dense<0.000000e+00> : vector<8x8xf32>
    %67 = tpu.matmul %64, %65, %cst_29 {dimension_numbers = #tpu.dot_dimension_numbers<[1], [1], [0], [0], [0, 0, 1, 0], [], []>} : vector<8x8xf32>, vector<8x8xf32>, vector<8x8xf32> -> vector<8x8xf32>
    %cst_30 = arith.constant 0.353553385 : f32
    %68 = vector.broadcast %cst_30 : f32 to vector<8x8xf32>
    %69 = arith.mulf %67, %68 : vector<8x8xf32>
    %cst_31 = arith.constant dense<0xFF800000> : vector<8xf32>
    %70 = vector.multi_reduction <maximumf>, %69, %cst_31 [1] : vector<8x8xf32> to vector<8xf32>
    %71 = vector.shape_cast %70 : vector<8xf32> to vector<8x1xf32>
    %72 = vector.broadcast %71 : vector<8x1xf32> to vector<8x8xf32>
    %73 = arith.subf %69, %72 : vector<8x8xf32>
    %74 = math.exp %73 : vector<8x8xf32>
    %cst_32 = arith.constant dense<0.000000e+00> : vector<8xf32>
    %75 = vector.multi_reduction <add>, %74, %cst_32 [1] : vector<8x8xf32> to vector<8xf32>
    %76 = vector.shape_cast %75 : vector<8xf32> to vector<8x1xf32>
    %77 = vector.broadcast %76 : vector<8x1xf32> to vector<8x8xf32>
    %78 = arith.divf %74, %77 : vector<8x8xf32>
    %cst_33 = arith.constant dense<0.000000e+00> : vector<8x8xf32>
    %79 = tpu.matmul %78, %66, %cst_33 {dimension_numbers = #tpu.dot_dimension_numbers<[1], [0], [0], [1], [0, 0, 1, 1], [], []>} : vector<8x8xf32>, vector<8x8xf32>, vector<8x8xf32> -> vector<8x8xf32>
    %80 = tpu.concatenate %31, %47, %63, %79 in 1 : vector<8x8xf32>, vector<8x8xf32>, vector<8x8xf32>, vector<8x8xf32> -> vector<8x32xf32>
    %c0_34 = arith.constant 0 : index
    %c0_35 = arith.constant 0 : index
    %81 = vector.load %arg7[%c0_34, %c0_35] : memref<32x32xf32, #tpu.memory_space<vmem>>, vector<32x32xf32>
    %cst_36 = arith.constant dense<0.000000e+00> : vector<8x32xf32>
    %82 = tpu.matmul %80, %81, %cst_36 {dimension_numbers = #tpu.dot_dimension_numbers<[1], [0], [0], [1], [0, 0, 1, 1], [], []>} : vector<8x32xf32>, vector<32x32xf32>, vector<8x32xf32> -> vector<8x32xf32>
    %c0_37 = arith.constant 0 : index
    %c0_38 = arith.constant 0 : index
    %83 = vector.load %arg8[%c0_37, %c0_38] : memref<1x32xf32, #tpu.memory_space<vmem>>, vector<1x32xf32>
    %84 = vector.broadcast %83 : vector<1x32xf32> to vector<8x32xf32>
    %85 = arith.addf %82, %84 : vector<8x32xf32>
    %86 = arith.addf %85, %1 : vector<8x32xf32>
    %c0_39 = arith.constant 0 : index
    %c0_40 = arith.constant 0 : index
    %87 = vector.load %arg9[%c0_39, %c0_40] : memref<1x32xf32, #tpu.memory_space<vmem>>, vector<1x32xf32>
    %c0_41 = arith.constant 0 : index
    %c0_42 = arith.constant 0 : index
    %88 = vector.load %arg10[%c0_41, %c0_42] : memref<1x32xf32, #tpu.memory_space<vmem>>, vector<1x32xf32>
    %cst_43 = arith.constant dense<0.000000e+00> : vector<8xf32>
    %89 = vector.multi_reduction <add>, %86, %cst_43 [1] : vector<8x32xf32> to vector<8xf32>
    %90 = vector.shape_cast %89 : vector<8xf32> to vector<8x1xf32>
    %cst_44 = arith.constant 3.200000e+01 : f32
    %91 = vector.broadcast %cst_44 : f32 to vector<8x1xf32>
    %92 = arith.divf %90, %91 : vector<8x1xf32>
    %93 = vector.broadcast %92 : vector<8x1xf32> to vector<8x32xf32>
    %94 = arith.subf %86, %93 : vector<8x32xf32>
    %95 = vector.broadcast %92 : vector<8x1xf32> to vector<8x32xf32>
    %96 = arith.subf %86, %95 : vector<8x32xf32>
    %97 = arith.mulf %94, %96 : vector<8x32xf32>
    %cst_45 = arith.constant dense<0.000000e+00> : vector<8xf32>
    %98 = vector.multi_reduction <add>, %97, %cst_45 [1] : vector<8x32xf32> to vector<8xf32>
    %99 = vector.shape_cast %98 : vector<8xf32> to vector<8x1xf32>
    %cst_46 = arith.constant 3.200000e+01 : f32
    %100 = vector.broadcast %cst_46 : f32 to vector<8x1xf32>
    %101 = arith.divf %99, %100 : vector<8x1xf32>
    %102 = vector.broadcast %92 : vector<8x1xf32> to vector<8x32xf32>
    %103 = arith.subf %86, %102 : vector<8x32xf32>
    %cst_47 = arith.constant 9.99999974E-6 : f32
    %104 = vector.broadcast %cst_47 : f32 to vector<8x1xf32>
    %105 = arith.addf %101, %104 : vector<8x1xf32>
    %106 = math.rsqrt %105 : vector<8x1xf32>
    %107 = vector.broadcast %106 : vector<8x1xf32> to vector<8x32xf32>
    %108 = arith.mulf %103, %107 : vector<8x32xf32>
    %109 = vector.broadcast %87 : vector<1x32xf32> to vector<8x32xf32>
    %110 = arith.mulf %108, %109 : vector<8x32xf32>
    %111 = vector.broadcast %88 : vector<1x32xf32> to vector<8x32xf32>
    %112 = arith.addf %110, %111 : vector<8x32xf32>
    %c0_48 = arith.constant 0 : index
    %c0_49 = arith.constant 0 : index
    %c0_50 = arith.constant 0 : index
    %113 = vector.load %arg11[%c0_48, %c0_49, %c0_50] : memref<1x8x32xf32, #tpu.memory_space<vmem>>, vector<1x8x32xf32>
    %114 = vector.shape_cast %113 : vector<1x8x32xf32> to vector<8x32xf32>
    %115 = vector.shape_cast %112 : vector<8x32xf32> to vector<1x8x32xf32>
    tpu.vector_store %arg11[%c0_48, %c0_49, %c0_50], %115 {strides = array<i32>} : memref<1x8x32xf32, #tpu.memory_space<vmem>>, vector<1x8x32xf32>,
    return
  }
  func.func @transform_0(%arg0: i32) -> (i32, i32, i32) {
    %c0_i32 = arith.constant 0 : i32
    %c0_i32_0 = arith.constant 0 : i32
    %c0_i32_1 = arith.constant 0 : i32
    return %arg0, %c0_i32, %c0_i32_0 : i32, i32, i32
  }
  func.func @transform_1(%arg0: i32) -> (i32, i32, i32) {
    %c0_i32 = arith.constant 0 : i32
    %c0_i32_0 = arith.constant 0 : i32
    %c0_i32_1 = arith.constant 0 : i32
    return %arg0, %c0_i32, %c0_i32_0 : i32, i32, i32
  }
  func.func @transform_2(%arg0: i32) -> (i32, i32) {
    %c0_i32 = arith.constant 0 : i32
    %c0_i32_0 = arith.constant 0 : i32
    %c0_i32_1 = arith.constant 0 : i32
    return %c0_i32, %c0_i32_0 : i32, i32
  }
  func.func @transform_3(%arg0: i32) -> (i32, i32) {
    %c0_i32 = arith.constant 0 : i32
    %c0_i32_0 = arith.constant 0 : i32
    %c0_i32_1 = arith.constant 0 : i32
    return %c0_i32, %c0_i32_0 : i32, i32
  }
  func.func @transform_4(%arg0: i32) -> (i32, i32) {
    %c0_i32 = arith.constant 0 : i32
    %c0_i32_0 = arith.constant 0 : i32
    %c0_i32_1 = arith.constant 0 : i32
    return %c0_i32, %c0_i32_0 : i32, i32
  }
  func.func @transform_5(%arg0: i32) -> (i32, i32) {
    %c0_i32 = arith.constant 0 : i32
    %c0_i32_0 = arith.constant 0 : i32
    %c0_i32_1 = arith.constant 0 : i32
    return %c0_i32, %c0_i32_0 : i32, i32
  }
  func.func @transform_6(%arg0: i32) -> (i32, i32) {
    %c0_i32 = arith.constant 0 : i32
    %c0_i32_0 = arith.constant 0 : i32
    %c0_i32_1 = arith.constant 0 : i32
    return %c0_i32, %c0_i32_0 : i32, i32
  }
  func.func @transform_7(%arg0: i32) -> (i32, i32) {
    %c0_i32 = arith.constant 0 : i32
    %c0_i32_0 = arith.constant 0 : i32
    %c0_i32_1 = arith.constant 0 : i32
    return %c0_i32, %c0_i32_0 : i32, i32
  }
  func.func @transform_8(%arg0: i32) -> (i32, i32) {
    %c0_i32 = arith.constant 0 : i32
    %c0_i32_0 = arith.constant 0 : i32
    %c0_i32_1 = arith.constant 0 : i32
    return %c0_i32, %c0_i32_0 : i32, i32
  }
  func.func @transform_9(%arg0: i32) -> (i32, i32) {
    %c0_i32 = arith.constant 0 : i32
    %c0_i32_0 = arith.constant 0 : i32
    %c0_i32_1 = arith.constant 0 : i32
    return %c0_i32, %c0_i32_0 : i32, i32
  }
  func.func @transform_10(%arg0: i32) -> (i32, i32, i32) {
    %c0_i32 = arith.constant 0 : i32
    %c0_i32_0 = arith.constant 0 : i32
    %c0_i32_1 = arith.constant 0 : i32
    return %arg0, %c0_i32, %c0_i32_0 : i32, i32, i32
  }
}

module attributes {stable_mosaic.version = 11 : i64} {
  func.func @_attn_block_kernel(%arg0: i32, %arg1: memref<1x8x32xf32, #tpu.memory_space<vmem>>, %arg2: memref<1x16x64xf32, #tpu.memory_space<vmem>>, %arg3: memref<32x32xf32, #tpu.memory_space<vmem>>, %arg4: memref<1x32xf32, #tpu.memory_space<vmem>>, %arg5: memref<64x64xf32, #tpu.memory_space<vmem>>, %arg6: memref<1x64xf32, #tpu.memory_space<vmem>>, %arg7: memref<32x32xf32, #tpu.memory_space<vmem>>, %arg8: memref<1x32xf32, #tpu.memory_space<vmem>>, %arg9: memref<1x32xf32, #tpu.memory_space<vmem>>, %arg10: memref<1x32xf32, #tpu.memory_space<vmem>>, %arg11: memref<1x8x32xf32, #tpu.memory_space<vmem>>) attributes {dimension_semantics = [#tpu.dimension_semantics<parallel>], iteration_bounds = array<i64: 2>, scalar_prefetch = 0 : i64, scratch_operands = 0 : i64, tpu.core_type = #tpu.core_type<tc>, window_params = [{transform_indices = @transform_0, window_bounds = array<i64: 1, 8, 32>}, {transform_indices = @transform_1, window_bounds = array<i64: 1, 16, 64>}, {pipeline_mode = #tpu.pipeline_mode<synchronous>, transform_indices = @transform_2, window_bounds = array<i64: 32, 32>}, {pipeline_mode = #tpu.pipeline_mode<synchronous>, transform_indices = @transform_3, window_bounds = array<i64: 1, 32>}, {pipeline_mode = #tpu.pipeline_mode<synchronous>, transform_indices = @transform_4, window_bounds = array<i64: 64, 64>}, {pipeline_mode = #tpu.pipeline_mode<synchronous>, transform_indices = @transform_5, window_bounds = array<i64: 1, 64>}, {pipeline_mode = #tpu.pipeline_mode<synchronous>, transform_indices = @transform_6, window_bounds = array<i64: 32, 32>}, {pipeline_mode = #tpu.pipeline_mode<synchronous>, transform_indices = @transform_7, window_bounds = array<i64: 1, 32>}, {pipeline_mode = #tpu.pipeline_mode<synchronous>, transform_indices = @transform_8, window_bounds = array<i64: 1, 32>}, {pipeline_mode = #tpu.pipeline_mode<synchronous>, transform_indices = @transform_9, window_bounds = array<i64: 1, 32>}, {transform_indices = @transform_10, window_bounds = array<i64: 1, 8, 32>}]} {
    %c0 = arith.constant 0 : index
    %c0_0 = arith.constant 0 : index
    %c0_1 = arith.constant 0 : index
    %0 = vector.load %arg1[%c0, %c0_0, %c0_1] : memref<1x8x32xf32, #tpu.memory_space<vmem>>, vector<1x8x32xf32>
    %1 = vector.shape_cast %0 : vector<1x8x32xf32> to vector<8x32xf32>
    %c0_2 = arith.constant 0 : index
    %c0_3 = arith.constant 0 : index
    %c0_4 = arith.constant 0 : index
    %2 = vector.load %arg2[%c0_2, %c0_3, %c0_4] : memref<1x16x64xf32, #tpu.memory_space<vmem>>, vector<1x16x64xf32>
    %3 = vector.shape_cast %2 : vector<1x16x64xf32> to vector<16x64xf32>
    %c0_5 = arith.constant 0 : index
    %c0_6 = arith.constant 0 : index
    %4 = vector.load %arg3[%c0_5, %c0_6] : memref<32x32xf32, #tpu.memory_space<vmem>>, vector<32x32xf32>
    %cst = arith.constant dense<0.000000e+00> : vector<8x32xf32>
    %5 = tpu.matmul %1, %4, %cst {dimension_numbers = #tpu.dot_dimension_numbers<[1], [0], [0], [1], [0, 0, 1, 1], [], []>} : vector<8x32xf32>, vector<32x32xf32>, vector<8x32xf32> -> vector<8x32xf32>
    %c0_7 = arith.constant 0 : index
    %c0_8 = arith.constant 0 : index
    %6 = vector.load %arg4[%c0_7, %c0_8] : memref<1x32xf32, #tpu.memory_space<vmem>>, vector<1x32xf32>
    %7 = vector.broadcast %6 : vector<1x32xf32> to vector<8x32xf32>
    %8 = arith.addf %5, %7 : vector<8x32xf32>
    %c0_9 = arith.constant 0 : index
    %c0_10 = arith.constant 0 : index
    %9 = vector.load %arg5[%c0_9, %c0_10] : memref<64x64xf32, #tpu.memory_space<vmem>>, vector<64x64xf32>
    %cst_11 = arith.constant dense<0.000000e+00> : vector<16x64xf32>
    %10 = tpu.matmul %3, %9, %cst_11 {dimension_numbers = #tpu.dot_dimension_numbers<[1], [0], [0], [1], [0, 0, 1, 1], [], []>} : vector<16x64xf32>, vector<64x64xf32>, vector<16x64xf32> -> vector<16x64xf32>
    %c0_12 = arith.constant 0 : index
    %c0_13 = arith.constant 0 : index
    %11 = vector.load %arg6[%c0_12, %c0_13] : memref<1x64xf32, #tpu.memory_space<vmem>>, vector<1x64xf32>
    %12 = vector.broadcast %11 : vector<1x64xf32> to vector<16x64xf32>
    %13 = arith.addf %10, %12 : vector<16x64xf32>
    %14 = vector.extract_strided_slice %13 {offsets = [0, 0], sizes = [16, 32], strides = [1, 1]} : vector<16x64xf32> to vector<16x32xf32>
    %15 = vector.extract_strided_slice %13 {offsets = [0, 32], sizes = [16, 32], strides = [1, 1]} : vector<16x64xf32> to vector<16x32xf32>
    %16 = vector.extract_strided_slice %8 {offsets = [0, 0], sizes = [8, 8], strides = [1, 1]} : vector<8x32xf32> to vector<8x8xf32>
    %17 = vector.extract_strided_slice %14 {offsets = [0, 0], sizes = [16, 8], strides = [1, 1]} : vector<16x32xf32> to vector<16x8xf32>
    %18 = vector.extract_strided_slice %15 {offsets = [0, 0], sizes = [16, 8], strides = [1, 1]} : vector<16x32xf32> to vector<16x8xf32>
    %cst_14 = arith.constant dense<0.000000e+00> : vector<8x16xf32>
    %19 = tpu.matmul %16, %17, %cst_14 {dimension_numbers = #tpu.dot_dimension_numbers<[1], [1], [0], [0], [0, 0, 1, 0], [], []>} : vector<8x8xf32>, vector<16x8xf32>, vector<8x16xf32> -> vector<8x16xf32>
    %cst_15 = arith.constant 0.353553385 : f32
    %20 = vector.broadcast %cst_15 : f32 to vector<8x16xf32>
    %21 = arith.mulf %19, %20 : vector<8x16xf32>
    %cst_16 = arith.constant dense<0xFF800000> : vector<8xf32>
    %22 = vector.multi_reduction <maximumf>, %21, %cst_16 [1] : vector<8x16xf32> to vector<8xf32>
    %23 = vector.shape_cast %22 : vector<8xf32> to vector<8x1xf32>
    %24 = vector.broadcast %23 : vector<8x1xf32> to vector<8x16xf32>
    %25 = arith.subf %21, %24 : vector<8x16xf32>
    %26 = math.exp %25 : vector<8x16xf32>
    %cst_17 = arith.constant dense<0.000000e+00> : vector<8xf32>
    %27 = vector.multi_reduction <add>, %26, %cst_17 [1] : vector<8x16xf32> to vector<8xf32>
    %28 = vector.shape_cast %27 : vector<8xf32> to vector<8x1xf32>
    %29 = vector.broadcast %28 : vector<8x1xf32> to vector<8x16xf32>
    %30 = arith.divf %26, %29 : vector<8x16xf32>
    %cst_18 = arith.constant dense<0.000000e+00> : vector<8x8xf32>
    %31 = tpu.matmul %30, %18, %cst_18 {dimension_numbers = #tpu.dot_dimension_numbers<[1], [0], [0], [1], [0, 0, 1, 1], [], []>} : vector<8x16xf32>, vector<16x8xf32>, vector<8x8xf32> -> vector<8x8xf32>
    %32 = vector.extract_strided_slice %8 {offsets = [0, 8], sizes = [8, 8], strides = [1, 1]} : vector<8x32xf32> to vector<8x8xf32>
    %33 = vector.extract_strided_slice %14 {offsets = [0, 8], sizes = [16, 8], strides = [1, 1]} : vector<16x32xf32> to vector<16x8xf32>
    %34 = vector.extract_strided_slice %15 {offsets = [0, 8], sizes = [16, 8], strides = [1, 1]} : vector<16x32xf32> to vector<16x8xf32>
    %cst_19 = arith.constant dense<0.000000e+00> : vector<8x16xf32>
    %35 = tpu.matmul %32, %33, %cst_19 {dimension_numbers = #tpu.dot_dimension_numbers<[1], [1], [0], [0], [0, 0, 1, 0], [], []>} : vector<8x8xf32>, vector<16x8xf32>, vector<8x16xf32> -> vector<8x16xf32>
    %cst_20 = arith.constant 0.353553385 : f32
    %36 = vector.broadcast %cst_20 : f32 to vector<8x16xf32>
    %37 = arith.mulf %35, %36 : vector<8x16xf32>
    %cst_21 = arith.constant dense<0xFF800000> : vector<8xf32>
    %38 = vector.multi_reduction <maximumf>, %37, %cst_21 [1] : vector<8x16xf32> to vector<8xf32>
    %39 = vector.shape_cast %38 : vector<8xf32> to vector<8x1xf32>
    %40 = vector.broadcast %39 : vector<8x1xf32> to vector<8x16xf32>
    %41 = arith.subf %37, %40 : vector<8x16xf32>
    %42 = math.exp %41 : vector<8x16xf32>
    %cst_22 = arith.constant dense<0.000000e+00> : vector<8xf32>
    %43 = vector.multi_reduction <add>, %42, %cst_22 [1] : vector<8x16xf32> to vector<8xf32>
    %44 = vector.shape_cast %43 : vector<8xf32> to vector<8x1xf32>
    %45 = vector.broadcast %44 : vector<8x1xf32> to vector<8x16xf32>
    %46 = arith.divf %42, %45 : vector<8x16xf32>
    %cst_23 = arith.constant dense<0.000000e+00> : vector<8x8xf32>
    %47 = tpu.matmul %46, %34, %cst_23 {dimension_numbers = #tpu.dot_dimension_numbers<[1], [0], [0], [1], [0, 0, 1, 1], [], []>} : vector<8x16xf32>, vector<16x8xf32>, vector<8x8xf32> -> vector<8x8xf32>
    %48 = vector.extract_strided_slice %8 {offsets = [0, 16], sizes = [8, 8], strides = [1, 1]} : vector<8x32xf32> to vector<8x8xf32>
    %49 = vector.extract_strided_slice %14 {offsets = [0, 16], sizes = [16, 8], strides = [1, 1]} : vector<16x32xf32> to vector<16x8xf32>
    %50 = vector.extract_strided_slice %15 {offsets = [0, 16], sizes = [16, 8], strides = [1, 1]} : vector<16x32xf32> to vector<16x8xf32>
    %cst_24 = arith.constant dense<0.000000e+00> : vector<8x16xf32>
    %51 = tpu.matmul %48, %49, %cst_24 {dimension_numbers = #tpu.dot_dimension_numbers<[1], [1], [0], [0], [0, 0, 1, 0], [], []>} : vector<8x8xf32>, vector<16x8xf32>, vector<8x16xf32> -> vector<8x16xf32>
    %cst_25 = arith.constant 0.353553385 : f32
    %52 = vector.broadcast %cst_25 : f32 to vector<8x16xf32>
    %53 = arith.mulf %51, %52 : vector<8x16xf32>
    %cst_26 = arith.constant dense<0xFF800000> : vector<8xf32>
    %54 = vector.multi_reduction <maximumf>, %53, %cst_26 [1] : vector<8x16xf32> to vector<8xf32>
    %55 = vector.shape_cast %54 : vector<8xf32> to vector<8x1xf32>
    %56 = vector.broadcast %55 : vector<8x1xf32> to vector<8x16xf32>
    %57 = arith.subf %53, %56 : vector<8x16xf32>
    %58 = math.exp %57 : vector<8x16xf32>
    %cst_27 = arith.constant dense<0.000000e+00> : vector<8xf32>
    %59 = vector.multi_reduction <add>, %58, %cst_27 [1] : vector<8x16xf32> to vector<8xf32>
    %60 = vector.shape_cast %59 : vector<8xf32> to vector<8x1xf32>
    %61 = vector.broadcast %60 : vector<8x1xf32> to vector<8x16xf32>
    %62 = arith.divf %58, %61 : vector<8x16xf32>
    %cst_28 = arith.constant dense<0.000000e+00> : vector<8x8xf32>
    %63 = tpu.matmul %62, %50, %cst_28 {dimension_numbers = #tpu.dot_dimension_numbers<[1], [0], [0], [1], [0, 0, 1, 1], [], []>} : vector<8x16xf32>, vector<16x8xf32>, vector<8x8xf32> -> vector<8x8xf32>
    %64 = vector.extract_strided_slice %8 {offsets = [0, 24], sizes = [8, 8], strides = [1, 1]} : vector<8x32xf32> to vector<8x8xf32>
    %65 = vector.extract_strided_slice %14 {offsets = [0, 24], sizes = [16, 8], strides = [1, 1]} : vector<16x32xf32> to vector<16x8xf32>
    %66 = vector.extract_strided_slice %15 {offsets = [0, 24], sizes = [16, 8], strides = [1, 1]} : vector<16x32xf32> to vector<16x8xf32>
    %cst_29 = arith.constant dense<0.000000e+00> : vector<8x16xf32>
    %67 = tpu.matmul %64, %65, %cst_29 {dimension_numbers = #tpu.dot_dimension_numbers<[1], [1], [0], [0], [0, 0, 1, 0], [], []>} : vector<8x8xf32>, vector<16x8xf32>, vector<8x16xf32> -> vector<8x16xf32>
    %cst_30 = arith.constant 0.353553385 : f32
    %68 = vector.broadcast %cst_30 : f32 to vector<8x16xf32>
    %69 = arith.mulf %67, %68 : vector<8x16xf32>
    %cst_31 = arith.constant dense<0xFF800000> : vector<8xf32>
    %70 = vector.multi_reduction <maximumf>, %69, %cst_31 [1] : vector<8x16xf32> to vector<8xf32>
    %71 = vector.shape_cast %70 : vector<8xf32> to vector<8x1xf32>
    %72 = vector.broadcast %71 : vector<8x1xf32> to vector<8x16xf32>
    %73 = arith.subf %69, %72 : vector<8x16xf32>
    %74 = math.exp %73 : vector<8x16xf32>
    %cst_32 = arith.constant dense<0.000000e+00> : vector<8xf32>
    %75 = vector.multi_reduction <add>, %74, %cst_32 [1] : vector<8x16xf32> to vector<8xf32>
    %76 = vector.shape_cast %75 : vector<8xf32> to vector<8x1xf32>
    %77 = vector.broadcast %76 : vector<8x1xf32> to vector<8x16xf32>
    %78 = arith.divf %74, %77 : vector<8x16xf32>
    %cst_33 = arith.constant dense<0.000000e+00> : vector<8x8xf32>
    %79 = tpu.matmul %78, %66, %cst_33 {dimension_numbers = #tpu.dot_dimension_numbers<[1], [0], [0], [1], [0, 0, 1, 1], [], []>} : vector<8x16xf32>, vector<16x8xf32>, vector<8x8xf32> -> vector<8x8xf32>
    %80 = tpu.concatenate %31, %47, %63, %79 in 1 : vector<8x8xf32>, vector<8x8xf32>, vector<8x8xf32>, vector<8x8xf32> -> vector<8x32xf32>
    %c0_34 = arith.constant 0 : index
    %c0_35 = arith.constant 0 : index
    %81 = vector.load %arg7[%c0_34, %c0_35] : memref<32x32xf32, #tpu.memory_space<vmem>>, vector<32x32xf32>
    %cst_36 = arith.constant dense<0.000000e+00> : vector<8x32xf32>
    %82 = tpu.matmul %80, %81, %cst_36 {dimension_numbers = #tpu.dot_dimension_numbers<[1], [0], [0], [1], [0, 0, 1, 1], [], []>} : vector<8x32xf32>, vector<32x32xf32>, vector<8x32xf32> -> vector<8x32xf32>
    %c0_37 = arith.constant 0 : index
    %c0_38 = arith.constant 0 : index
    %83 = vector.load %arg8[%c0_37, %c0_38] : memref<1x32xf32, #tpu.memory_space<vmem>>, vector<1x32xf32>
    %84 = vector.broadcast %83 : vector<1x32xf32> to vector<8x32xf32>
    %85 = arith.addf %82, %84 : vector<8x32xf32>
    %86 = arith.addf %85, %1 : vector<8x32xf32>
    %c0_39 = arith.constant 0 : index
    %c0_40 = arith.constant 0 : index
    %87 = vector.load %arg9[%c0_39, %c0_40] : memref<1x32xf32, #tpu.memory_space<vmem>>, vector<1x32xf32>
    %c0_41 = arith.constant 0 : index
    %c0_42 = arith.constant 0 : index
    %88 = vector.load %arg10[%c0_41, %c0_42] : memref<1x32xf32, #tpu.memory_space<vmem>>, vector<1x32xf32>
    %cst_43 = arith.constant dense<0.000000e+00> : vector<8xf32>
    %89 = vector.multi_reduction <add>, %86, %cst_43 [1] : vector<8x32xf32> to vector<8xf32>
    %90 = vector.shape_cast %89 : vector<8xf32> to vector<8x1xf32>
    %cst_44 = arith.constant 3.200000e+01 : f32
    %91 = vector.broadcast %cst_44 : f32 to vector<8x1xf32>
    %92 = arith.divf %90, %91 : vector<8x1xf32>
    %93 = vector.broadcast %92 : vector<8x1xf32> to vector<8x32xf32>
    %94 = arith.subf %86, %93 : vector<8x32xf32>
    %95 = vector.broadcast %92 : vector<8x1xf32> to vector<8x32xf32>
    %96 = arith.subf %86, %95 : vector<8x32xf32>
    %97 = arith.mulf %94, %96 : vector<8x32xf32>
    %cst_45 = arith.constant dense<0.000000e+00> : vector<8xf32>
    %98 = vector.multi_reduction <add>, %97, %cst_45 [1] : vector<8x32xf32> to vector<8xf32>
    %99 = vector.shape_cast %98 : vector<8xf32> to vector<8x1xf32>
    %cst_46 = arith.constant 3.200000e+01 : f32
    %100 = vector.broadcast %cst_46 : f32 to vector<8x1xf32>
    %101 = arith.divf %99, %100 : vector<8x1xf32>
    %102 = vector.broadcast %92 : vector<8x1xf32> to vector<8x32xf32>
    %103 = arith.subf %86, %102 : vector<8x32xf32>
    %cst_47 = arith.constant 9.99999974E-6 : f32
    %104 = vector.broadcast %cst_47 : f32 to vector<8x1xf32>
    %105 = arith.addf %101, %104 : vector<8x1xf32>
    %106 = math.rsqrt %105 : vector<8x1xf32>
    %107 = vector.broadcast %106 : vector<8x1xf32> to vector<8x32xf32>
    %108 = arith.mulf %103, %107 : vector<8x32xf32>
    %109 = vector.broadcast %87 : vector<1x32xf32> to vector<8x32xf32>
    %110 = arith.mulf %108, %109 : vector<8x32xf32>
    %111 = vector.broadcast %88 : vector<1x32xf32> to vector<8x32xf32>
    %112 = arith.addf %110, %111 : vector<8x32xf32>
    %c0_48 = arith.constant 0 : index
    %c0_49 = arith.constant 0 : index
    %c0_50 = arith.constant 0 : index
    %113 = vector.load %arg11[%c0_48, %c0_49, %c0_50] : memref<1x8x32xf32, #tpu.memory_space<vmem>>, vector<1x8x32xf32>
    %114 = vector.shape_cast %113 : vector<1x8x32xf32> to vector<8x32xf32>
    %115 = vector.shape_cast %112 : vector<8x32xf32> to vector<1x8x32xf32>
    tpu.vector_store %arg11[%c0_48, %c0_49, %c0_50], %115 {strides = array<i32>} : memref<1x8x32xf32, #tpu.memory_space<vmem>>, vector<1x8x32xf32>,
    return
  }
  func.func @transform_0(%arg0: i32) -> (i32, i32, i32) {
    %c0_i32 = arith.constant 0 : i32
    %c0_i32_0 = arith.constant 0 : i32
    %c0_i32_1 = arith.constant 0 : i32
    return %arg0, %c0_i32, %c0_i32_0 : i32, i32, i32
  }
  func.func @transform_1(%arg0: i32) -> (i32, i32, i32) {
    %c0_i32 = arith.constant 0 : i32
    %c0_i32_0 = arith.constant 0 : i32
    %c0_i32_1 = arith.constant 0 : i32
    return %arg0, %c0_i32, %c0_i32_0 : i32, i32, i32
  }
  func.func @transform_2(%arg0: i32) -> (i32, i32) {
    %c0_i32 = arith.constant 0 : i32
    %c0_i32_0 = arith.constant 0 : i32
    %c0_i32_1 = arith.constant 0 : i32
    return %c0_i32, %c0_i32_0 : i32, i32
  }
  func.func @transform_3(%arg0: i32) -> (i32, i32) {
    %c0_i32 = arith.constant 0 : i32
    %c0_i32_0 = arith.constant 0 : i32
    %c0_i32_1 = arith.constant 0 : i32
    return %c0_i32, %c0_i32_0 : i32, i32
  }
  func.func @transform_4(%arg0: i32) -> (i32, i32) {
    %c0_i32 = arith.constant 0 : i32
    %c0_i32_0 = arith.constant 0 : i32
    %c0_i32_1 = arith.constant 0 : i32
    return %c0_i32, %c0_i32_0 : i32, i32
  }
  func.func @transform_5(%arg0: i32) -> (i32, i32) {
    %c0_i32 = arith.constant 0 : i32
    %c0_i32_0 = arith.constant 0 : i32
    %c0_i32_1 = arith.constant 0 : i32
    return %c0_i32, %c0_i32_0 : i32, i32
  }
  func.func @transform_6(%arg0: i32) -> (i32, i32) {
    %c0_i32 = arith.constant 0 : i32
    %c0_i32_0 = arith.constant 0 : i32
    %c0_i32_1 = arith.constant 0 : i32
    return %c0_i32, %c0_i32_0 : i32, i32
  }
  func.func @transform_7(%arg0: i32) -> (i32, i32) {
    %c0_i32 = arith.constant 0 : i32
    %c0_i32_0 = arith.constant 0 : i32
    %c0_i32_1 = arith.constant 0 : i32
    return %c0_i32, %c0_i32_0 : i32, i32
  }
  func.func @transform_8(%arg0: i32) -> (i32, i32) {
    %c0_i32 = arith.constant 0 : i32
    %c0_i32_0 = arith.constant 0 : i32
    %c0_i32_1 = arith.constant 0 : i32
    return %c0_i32, %c0_i32_0 : i32, i32
  }
  func.func @transform_9(%arg0: i32) -> (i32, i32) {
    %c0_i32 = arith.constant 0 : i32
    %c0_i32_0 = arith.constant 0 : i32
    %c0_i32_1 = arith.constant 0 : i32
    return %c0_i32, %c0_i32_0 : i32, i32
  }
  func.func @transform_10(%arg0: i32) -> (i32, i32, i32) {
    %c0_i32 = arith.constant 0 : i32
    %c0_i32_0 = arith.constant 0 : i32
    %c0_i32_1 = arith.constant 0 : i32
    return %arg0, %c0_i32, %c0_i32_0 : i32, i32, i32
  }
}

module attributes {stable_mosaic.version = 11 : i64} {
  func.func @_linear_kernel(%arg0: i32, %arg1: memref<16x32xf32, #tpu.memory_space<vmem>>, %arg2: memref<32x16xf32, #tpu.memory_space<vmem>>, %arg3: memref<1x16xf32, #tpu.memory_space<vmem>>, %arg4: memref<16x16xf32, #tpu.memory_space<vmem>>) attributes {dimension_semantics = [#tpu.dimension_semantics<arbitrary>], iteration_bounds = array<i64: 1>, scalar_prefetch = 0 : i64, scratch_operands = 0 : i64, tpu.core_type = #tpu.core_type<tc>, window_params = [{pipeline_mode = #tpu.pipeline_mode<synchronous>, transform_indices = @transform_0, window_bounds = array<i64: 16, 32>}, {pipeline_mode = #tpu.pipeline_mode<synchronous>, transform_indices = @transform_1, window_bounds = array<i64: 32, 16>}, {pipeline_mode = #tpu.pipeline_mode<synchronous>, transform_indices = @transform_2, window_bounds = array<i64: 1, 16>}, {pipeline_mode = #tpu.pipeline_mode<synchronous>, transform_indices = @transform_3, window_bounds = array<i64: 16, 16>}]} {
    %c0 = arith.constant 0 : index
    %c0_0 = arith.constant 0 : index
    %0 = vector.load %arg1[%c0, %c0_0] : memref<16x32xf32, #tpu.memory_space<vmem>>, vector<16x32xf32>
    %c0_1 = arith.constant 0 : index
    %c0_2 = arith.constant 0 : index
    %1 = vector.load %arg2[%c0_1, %c0_2] : memref<32x16xf32, #tpu.memory_space<vmem>>, vector<32x16xf32>
    %cst = arith.constant dense<0.000000e+00> : vector<16x16xf32>
    %2 = tpu.matmul %0, %1, %cst {dimension_numbers = #tpu.dot_dimension_numbers<[1], [0], [0], [1], [0, 0, 1, 1], [], []>} : vector<16x32xf32>, vector<32x16xf32>, vector<16x16xf32> -> vector<16x16xf32>
    %c0_3 = arith.constant 0 : index
    %c0_4 = arith.constant 0 : index
    %3 = vector.load %arg3[%c0_3, %c0_4] : memref<1x16xf32, #tpu.memory_space<vmem>>, vector<1x16xf32>
    %4 = vector.broadcast %3 : vector<1x16xf32> to vector<16x16xf32>
    %5 = arith.addf %2, %4 : vector<16x16xf32>
    %c0_5 = arith.constant 0 : index
    %c0_6 = arith.constant 0 : index
    %6 = vector.load %arg4[%c0_5, %c0_6] : memref<16x16xf32, #tpu.memory_space<vmem>>, vector<16x16xf32>
    tpu.vector_store %arg4[%c0_5, %c0_6], %5 {strides = array<i32>} : memref<16x16xf32, #tpu.memory_space<vmem>>, vector<16x16xf32>,
    return
  }
  func.func @transform_0(%arg0: i32) -> (i32, i32) {
    %c0_i32 = arith.constant 0 : i32
    %c0_i32_0 = arith.constant 0 : i32
    %c0_i32_1 = arith.constant 0 : i32
    return %c0_i32, %c0_i32_0 : i32, i32
  }
  func.func @transform_1(%arg0: i32) -> (i32, i32) {
    %c0_i32 = arith.constant 0 : i32
    %c0_i32_0 = arith.constant 0 : i32
    %c0_i32_1 = arith.constant 0 : i32
    return %c0_i32, %c0_i32_0 : i32, i32
  }
  func.func @transform_2(%arg0: i32) -> (i32, i32) {
    %c0_i32 = arith.constant 0 : i32
    %c0_i32_0 = arith.constant 0 : i32
    %c0_i32_1 = arith.constant 0 : i32
    return %c0_i32, %c0_i32_0 : i32, i32
  }
  func.func @transform_3(%arg0: i32) -> (i32, i32) {
    %c0_i32 = arith.constant 0 : i32
    %c0_i32_0 = arith.constant 0 : i32
    %c0_i32_1 = arith.constant 0 : i32
    return %c0_i32, %c0_i32_0 : i32, i32
  }
}

</mosaic_0001>

<bundles_post_ra>
// kernel: time_transformer_decoder.12
= control target key start
LH: loop header
LB: loop body
LE: loop exit
PB: predicated region body
PF: predicated region fallthrough
CT: control target
= control target key end

     0   :  { %s1286_s29 = smov 0   ;;  %s1398_s0 = inlined_call_operand.vmem [shape: f32[2,8,32], index: 0, kind: input, shape index: {}]   ;;  %s1399_s1 = inlined_call_operand.vmem [shape: f32[2,1,8], index: 1, kind: input, shape index: {}]   ;;  %s1400_s2 = inlined_call_operand.vmem [shape: f32[32,64], index: 2, kind: input, shape index: {}]   ;;  %s1401_s3 = inlined_call_operand.vmem [shape: f32[1,64], index: 3, kind: input, shape index: {}]   ;;  %s1402_s4 = inlined_call_operand.vmem [shape: f32[8,64], index: 4, kind: input, shape index: {}]   ;;  %s1403_s5 = inlined_call_operand.vmem [shape: f32[1,64], index: 5, kind: input, shape index: {}]   ;;  %s1404_s6 = inlined_call_operand.vmem [shape: f32[8,64], index: 6, kind: input, shape index: {}]   ;;  %s1405_s7 = inlined_call_operand.vmem [shape: f32[64,32], index: 7, kind: input, shape index: {}]   ;;  %s1406_s8 = inlined_call_operand.vmem [shape: f32[1,32], index: 8, kind: input, shape index: {}]   ;;  %s1407_s9 = inlined_call_operand.vmem [shape: f32[8,32], index: 9, kind: input, shape index: {}]   ;;  %s1408_s10 = inlined_call_operand.vmem [shape: f32[1,32], index: 10, kind: input, shape index: {}]   ;;  %s1409_s11 = inlined_call_operand.vmem [shape: f32[8,32], index: 11, kind: input, shape index: {}]   ;;  %s1410_s12 = inlined_call_operand.vmem [shape: f32[1,32], index: 12, kind: input, shape index: {}]   ;;  %s1411_s13 = inlined_call_operand.vmem [shape: f32[1,32], index: 13, kind: input, shape index: {}]   ;;  %s1412_s14 = inlined_call_operand.vmem [shape: f32[2,8,32], index: 14, kind: output, shape index: {}]  }
   0x1 LB: > { %s1070_s30 = sadd.s32 4294967295, %s1206_s29   ;;  %p1074_p0 = scmp.ge.s32.totalorder %s1206_s29, 1  ;;  %s1206_s29 = sphi %s1286_s29, %s24_s29  }
   0x2   : > { %p419_p1 = scmp.lt.s32.totalorder %s1206_s29, 3 }
   0x4   : > { %p420_p2 = pnand %p1074_p0, %p419_p1 }
   0x5   : > { %v479_v0 = vld [vmem:[%s1400_s2] sm:$0xff] (!%p420_p2)  ;;  %v480_v1 = vld [vmem:[%s1400_s2 + $0x8] sm:$0xff] (!%p420_p2)  ;;  %v481_v2 = vld [vmem:[%s1400_s2 + $0x10] sm:$0xff] (!%p420_p2)  ;;  %v1208_v3 = vmov (!%p420_p2), 0.0|0.0   ;;  %vm1209_vm0 = vmmov (!%p420_p2), 0   ;;  %v1210_v6 = vmov (!%p420_p2), 0.0   ;;  %v646_v38 = vlaneseq (!%p420_p2) }
   0x6   : > { %423 = sbr.rel (%p420_p2) target bundleno = 805 (0x325), region = 76  ;;  %1161 = vmatprep.subr.bf16.mxu0 (!%p420_p2), %v1208_v3  ;;  %v1162_v4 = vpack.c.bf16 (!%p420_p2), %v480_v1, %v479_v0  ;;  %v482_v5 = vld [vmem:[%s1400_s2 + $0x18] sm:$0xff] (!%p420_p2)  ;;  %1119 = vmatprep.mubr.msk.f32.mxu0 (!%p420_p2), %vm1209_vm0, %v1210_v6  ;;  %p466_p3 = scmp.lt.s32.totalorder (!%p420_p2), %s1070_s30, 1  ;;  %v651_v7 = vld [vmem:[%s1404_s6] sm:$0xff] (!%p420_p2)  ;;  %vm566_vm1 = vcmask (!%p420_p2), 64512   ;;  %vm490_vm2 = vcmask (!%p420_p2), 261120  }
   0x7   : > { %1127 = vmatprep.subr.mxu1 (!%p420_p2), %v1210_v6  ;;  %1129 = vmatprep.mubr.msk.f32.mxu1 (!%p420_p2), %vm1209_vm0, %v1210_v6  ;;  %v1165_v8 = vpack.c.bf16 (!%p420_p2), %v482_v5, %v481_v2  ;;  %v564_v11 = vld [vmem:[%s1402_s4] sm:$0xff] (!%p420_p2)  ;;  %v729_v14 = vld [vmem:[%s1405_s7 + $0x8] sm:$0xff] (!%p420_p2)  ;;  %v730_v15 = vld [vmem:[%s1405_s7 + $0x10] sm:$0xff] (!%p420_p2)  ;;  %v647_v39 = vshrl.u32 (!%p420_p2), %v646_v38, 7  ;;  %vm743_vm3 = vcmask (!%p420_p2), 523264  }
   0x8   : > { %1163 = vmatpush3.bf16.msra.mxu0 (!%p420_p2), %v1162_v4  ;;  %1128 = vmatpush3.msra.mxu1 (!%p420_p2), %v651_v7  ;;  %v817_v12 = vld [vmem:[%s1407_s9] sm:$0xff] (!%p420_p2)  ;;  %v731_v17 = vld [vmem:[%s1405_s7 + $0x18] sm:$0xff] (!%p420_p2)  ;;  %v733_v20 = vld [vmem:[%s1405_s7 + $0x28] sm:$0xff] (!%p420_p2) }
   0x9   : > { %1164 = vmatprep.subr.bf16.mxu0 (!%p420_p2), %v1208_v3  ;;  %1167 = vmatprep.subr.bf16.mxu1 (!%p420_p2), %v1208_v3  ;;  %v728_v13 = vld [vmem:[%s1405_s7] sm:$0xff] (!%p420_p2)  ;;  %v1171_v18 = vpack.c.bf16 (!%p420_p2), %v731_v17, %v730_v15  ;;  %v734_v22 = vld [vmem:[%s1405_s7 + $0x30] sm:$0xff] (!%p420_p2)  ;;  %v735_v23 = vld [vmem:[%s1405_s7 + $0x38] sm:$0xff] (!%p420_p2)  ;;  %v648_v40 = vsub.s32 (!%p420_p2), 0, %v647_v39 }
   0xa   : > { %v1168_v16 = vpack.c.bf16 (!%p420_p2), %v729_v14, %v728_v13  ;;  %v732_v19 = vld [vmem:[%s1405_s7 + $0x20] sm:$0xff] (!%p420_p2)  ;;  %v1177_v24 = vpack.c.bf16 (!%p420_p2), %v735_v23, %v734_v22 }
   0xb   : > { %v1174_v21 = vpack.c.bf16 (!%p420_p2), %v733_v20, %v732_v19  ;;  %v900_v25 = vld [vmem:[%s1409_s11] sm:$0xff] (!%p420_p2) }
   0xc   : > { %1166 = vmatpush3.bf16.msra.mxu0 (!%p420_p2), %v1165_v8  ;;  %v565_v30 = vld [vmem:[%s1403_s5] sm:$0x1] (!%p420_p2) }
   0xd   : > { %s1414_s30 = smov (!%p466_p3, %s1070_s30), 1  ;;  %1122 = vmatprep.subr.mxu0 %v1210_v6  ;;  %v1077_v41 = vld [vmem:[%s1401_s3] ss:$0 sm:$0xff] }
   0xe   : > { %s1075_s25 = sshll.u32 %s1414_s30, 3  ;;  %s472_s28 = scalar_lea.vmem %s1399_s1, %s1414_s30  ;;  %v818_v53 = vld [vmem:[%s1408_s10] sm:$0x1] }
   0xf   : > { %s469_s17 = scalar_lea.vmem %s1398_s0, %s1075_s25  ;;  %v478_v9 = vld [vmem:[%s472_s28] sm:$0x1]  ;;  %s476_s15 = scalar_lea.vmem %s1412_s14, %s1075_s25 }
  0x10   : > { %v1323_v10 = vld [vmem:[%s469_s17] sm:$0xff]  ;;  %1130 = vmatmul.mubr.msk.f32.vlgmr.msra.gmra.mrb[0].mxu1 %vm566_vm1, %v478_v9 }
  0x11   : > { %1148 = vmatprep.mubr.msk.f32.mxu1 %vm1209_vm0, %v1210_v6  ;;  %1120 = vmatmul.mubr.msk.f32.vlgmr.msra.gmra.mrb[0].mxu0 %vm490_vm2, %v1323_v10  ;;  %v1081_v60 = vld [vmem:[%s1406_s8] ss:$0 sm:$0xff] }
  0x12   : > { %1123 = vmatpush3.msra.mxu0 %v564_v11  ;;  %1124 = vmatprep.mubr.msk.f32.mxu0 %vm1209_vm0, %v1210_v6  ;;  %v1086_v17 = vld [vmem:[%s1411_s13] ss:$0 sm:$0xff] }
  0x13   : > { %1151 = vmatprep.subr.mxu0 %v1210_v6  ;;  %1169 = vmatpush3.bf16.msra.mxu1 %v1168_v16 }
  0x14   : > { %1170 = vmatprep.subr.bf16.mxu1 %v1208_v3 }
  0x15   : > { %1125 = vmatmul.mubr.msk.f32.vlgmr.msra.gmra.mrb[2].mxu0 %vm566_vm1, %v478_v9 }
  0x16   : > { %1153 = vmatprep.mubr.msk.f32.mxu0 %vm1209_vm0, %v1210_v6  ;;  %1152 = vmatpush3.msra.mxu0 %v817_v12 }
  0x17   : > { %1156 = vmatprep.subr.mxu0 %v1210_v6  ;;  %1172 = vmatpush3.bf16.msra.mxu1 %v1171_v18 }
  0x18   : > { %1173 = vmatprep.subr.bf16.mxu1 %v1208_v3 }
  0x19   : > { %1154 = vmatmul.mubr.msk.f32.vlgmr.msra.gmra.mrb[4].mxu0 %vm566_vm1, %v478_v9 }
  0x1a   : > { %1158 = vmatprep.mubr.msk.f32.mxu0 %vm1209_vm0, %v1210_v6  ;;  %1157 = vmatpush3.msra.mxu0 %v900_v25 }
  0x1b   : > { %1175 = vmatpush3.bf16.msra.mxu1 %v1174_v21 }
  0x1c   : > { %1176 = vmatprep.subr.bf16.mxu1 %v1208_v3 }
  0x1d   : > { %1159 = vmatmul.mubr.msk.f32.vlgmr.msra.gmra.mrb[6].mxu0 %vm566_vm1, %v478_v9 }
  0x1f   : > { %1178 = vmatpush3.bf16.msra.mxu1 %v1177_v24 }
  0xe3   : > { %v718_v26 = vpop.f32.mrb[0].mxu1 }
  0xe4   : > { %v1131_v27 = vpop.f32.mrb[1].mxu1  ;;  %v560_v28 = vpop.f32.mrb[0].mxu0  ;;  %v725_v45 = vrot.slane %v718_v26, %v648_v40 }
  0xe5   : > { %v1121_v29 = vpop.f32.mrb[1].mxu0  ;;  %v561_v43 = vadd.f32 %v1077_v41, %v560_v28 }
  0xe8   : > { %v636_v31 = vpop.f32.mrb[2].mxu0 }
  0xe9   : > { %v637_v32 = vadd.f32 %v636_v31, %v565_v30  ;;  %v1126_v33 = vpop.f32.mrb[3].mxu0 }
  0xeb   : > { %v640_v34 = vsub.f32 0.0, %v637_v32 }
  0xec   : > { %v885_v49 = vpop.f32.mrb[4].mxu0 }
  0xed   : > { %v641_v35 = vmul.f32 1.442695, %v640_v34  ;;  %v1155_v50 = vpop.f32.mrb[5].mxu0  ;;  %v886_v54 = vadd.f32 %v885_v49, %v818_v53 }
  0xef   : > { %1190 = vpow2.f32 %v641_v35  ;;  %v889_v55 = vsub.f32 0.0, %v886_v54 }
  0xf0   : > { %v967_v51 = vpop.f32.mrb[6].mxu0 }
  0xf1   : > { %v1160_v52 = vpop.f32.mrb[7].mxu0  ;;  %v890_v56 = vmul.f32 1.442695, %v889_v55  ;;  %v974_v1 = vrot.slane %v967_v51, %v648_v40 }
  0xf9   : > { %v1191_v36 = vpop.eup %1190 }
  0xfa   : > { %v643_v37 = vadd.f32 1.0, %v1191_v36 }
  0xfc   : > { %1192 = vrcp.f32 %v643_v37 }
  0xfd   : > { %1194 = vpow2.f32 %v890_v56 }
 0x106   : > { %v1193_v42 = vpop.eup %1192 }
 0x107   : > { %v649_v44 = vrot.slane %v1193_v42, %v648_v40  ;;  %v1195_v57 = vpop.eup %1194 }
 0x108   : > { %v892_v58 = vadd.f32 1.0, %v1195_v57 }
 0x109   : > { %v650_v46 = vmul.f32 %v649_v44, %v561_v43 }
 0x10a   : > { %1196 = vrcp.f32 %v892_v58 }
 0x10b   : > { %v726_v47 = vadd.f32 %v725_v45, %v650_v46 }
 0x10d   : > { %v727_v48 = vmax.f32 %v726_v47, 0.0 }
 0x10f   : > { %1149 = vmatmul.mubr.msk.f32.vlgmr.msra.gmra.mrb[2].mxu1 %vm743_vm3, %v727_v48 }
 0x114   : > { %v1197_v59 = vpop.eup %1196 }
 0x115   : > { %v898_v61 = vrot.slane %v1197_v59, %v648_v40 }
 0x1e2   : > { %v813_v62 = vpop.f32.mrb[2].mxu1 }
 0x1e3   : > { %v814_v63 = vadd.f32 %v1081_v60, %v813_v62  ;;  %v1150_v0 = vpop.f32.mrb[3].mxu1 }
 0x1e5   : > { %v899_v2 = vmul.f32 %v898_v61, %v814_v63 }
 0x1e7   : > { %v975_v3 = vadd.f32 %v974_v1, %v899_v2 }
 0x1e9   : > { %v976_v4 = vadd.f32 %v975_v3, %v1323_v10  ;;  %v1085_v10 = vld [vmem:[%s1410_s12] ss:$0 sm:$0xff] }
 0x1eb   : > { %v979_v5 = vsel %vm490_vm2, %v976_v4, 0.0 }
 0x1ec   : > { %980 = vadd.xlane.f32.xlu0 %v979_v5 }
 0x279   : > { %v981_v6 = vpop.xlane.xlu0 %980 }
 0x27a   : > { %v983_v7 = vmul.f32 0.03125, %v981_v6 }
 0x27c   : > { %v984_v8 = vsub.f32 %v976_v4, %v983_v7 }
 0x27e   : > { %v985_v9 = vmul.f32 %v984_v8, %v984_v8 }
 0x280   : > { %v986_v11 = vsel %vm490_vm2, %v985_v9, 0.0 }
 0x281   : > { %987 = vadd.xlane.f32.xlu0 %v986_v11 }
 0x30e   : > { %v988_v12 = vpop.xlane.xlu0 %987 }
 0x30f   : > { %v989_v13 = vmul.f32 0.03125, %v988_v12 }
 0x311   : > { %v990_v14 = vadd.f32 1e-05, %v989_v13 }
 0x313   : > { %1198 = vrsqrt.f32 %v990_v14 }
 0x31d   : > { %v1199_v15 = vpop.eup %1198 }
 0x31e   : > { %v992_v16 = vmul.f32 %v1199_v15, %v984_v8 }
 0x320   : > { %v999_v18 = vmul.f32 %v1085_v10, %v992_v16 }
 0x322   : > { %v1006_v19 = vadd.f32 %v1086_v17, %v999_v18 }
 0x324   : > { %1007 = vst.msk [vmem:[%s476_s15] sm:$0xff] %vm490_vm2, %v1006_v19 }
 0x325 PF: > { %s24_s29 = sadd.s32 1, %s1206_s29  }
 0x326   : > { %p21_p4 = scmp.ge.s32.totalorder %s24_s29, 4  }
 0x328   :  { %23 = sbr.rel (!%p21_p4) target bundleno = 1 (0x1), region = 109 }

// kernel: time_transformer_decoder.19
= control target key start
LH: loop header
LB: loop body
LE: loop exit
PB: predicated region body
PF: predicated region fallthrough
CT: control target
= control target key end

     0   :  { %vm28_vm0 = vcmask 261120   ;;  %s240_s0 = inlined_call_operand.vmem [shape: f32[16,32], index: 0, kind: input, shape index: {}]   ;;  %s241_s1 = inlined_call_operand.vmem [shape: f32[32,16], index: 1, kind: input, shape index: {}]   ;;  %s242_s2 = inlined_call_operand.vmem [shape: f32[1,16], index: 2, kind: input, shape index: {}]   ;;  %s243_s3 = inlined_call_operand.hbm [shape: f32[16,16], index: 3, kind: output, shape index: {}]  }
   0x1   :  { %v17_v0 = vld [vmem:[%s241_s1] sm:$0xff]  ;;  %v18_v1 = vld [vmem:[%s241_s1 + $0x8] sm:$0xff]  ;;  %v19_v2 = vld [vmem:[%s241_s1 + $0x10] sm:$0xff] }
   0x2   :  { %v149_v3 = vpack.c.bf16 %v18_v1, %v17_v0  ;;  %v20_v4 = vld [vmem:[%s241_s1 + $0x18] sm:$0xff]  ;;  %v15_v5 = vld [vmem:[%s240_s0] sm:$0xff] }
   0x3   :  { %v153_v6 = vpack.c.bf16 %v20_v4, %v19_v2  ;;  %146 = vmatprep.mubr.msk.f32.mxu0 %vm28_vm0, %v15_v5 }
   0x4   :  { %8 = vsyncpa [#allocation3], 0  ;;  %150 = vmatprep.subr.bf16.mxu0 %v149_v3  ;;  %v16_v7 = vld [vmem:[%s240_s0 + $0x8] sm:$0xff]  ;;  %v129_v8 = vld [vmem:[%s242_s2] ss:$0 sm:$0xff]  ;;  %s184_s1 = smov [#allocation2]  }
   0x5   :  { %152 = vmatpush3.bf16.msra.mxu0 %v149_v3  ;;  %s118_s26 = sshll.u32 %s184_s1, 4  ;;  %vm110_vm1 = vcmask 130048   ;;  %s119_s26 = int_to_ptr.vmem [resolvable:$true] %s118_s26 }
   0x6   :  { %154 = vmatprep.subr.bf16.mxu0 %v153_v6  ;;  %s160_s27 = scalar_lea.vmem %s119_s26, 256  ;;  %p165_p1 = scmp.lt.s32.totalorder %s119_s26, %s119_s26 }
   0x7   :  { %p161_p0 = scmp.ne.s32.totalorder %s119_s26, %s160_s27  ;;  %p166_p2 = scmp.lt.s32.totalorder %s160_s27, %s160_s27 }
   0x9   :  { %156 = vmatpush3.bf16.msra.mxu0 %v153_v6  ;;  %p167_p3 = por %p166_p2, %p165_p1 }
   0xb   :  { %p168_p4 = pnand %p167_p3, %p161_p0 }
   0xc   :  { %147 = vmatmul.mubr.msk.f32.vlgmr.msra.gmra.mrb[0].mxu0 %vm28_vm0, %v16_v7 }
  0xdf   :  { %v148_v9 = vpop.f32.mrb[0].mxu0 }
  0xe0   :  { %v107_v10 = vadd.f32 %v148_v9, %v129_v8  ;;  %v101_v11 = vpop.f32.mrb[1].mxu0 }
  0xe1   :  { %v102_v12 = vadd.f32 %v129_v8, %v101_v11 }
  0xe2   :  { %112 = vst.msk [vmem:[#allocation2 + $0x8] sm:$0xff] %vm110_vm1, %v107_v10 }
  0xe3   :  { %111 = vst.msk [vmem:[#allocation2] sm:$0xff] %vm110_vm1, %v102_v12 }
  0xe4   :  { %171 = shalt.err (!%p168_p4)
}
  0xe5   :  { %s172_s2 = scalar_lea.hbm %s243_s3, 256 }
  0xe6   :  { %p173_p5 = scmp.ne.s32.totalorder %s243_s3, %s172_s2  ;;  %p176_p6 = scmp.lt.u32.totalorder %s172_s2, %s243_s3 }
  0xe8   :  { %p178_p7 = pnand %p176_p6, %p173_p5 }
  0xea   :  { %181 = shalt.err (!%p178_p7)
}
  0xeb   :  { %s185_s6 = smov 128   ;;  %s186_s7 = smov 8  }
  0xec   :  { %124 = dma.vmem_to_hbm [thread:$0]  %s119_s26, 256, %s243_s3, [#allocation3], %s185_s6, %s185_s6, %s186_s7  }
  0xed   :  { %182 = dma.done.wait [#allocation3], 256  }
  0xee   :  { %183 = vsyncadd [#allocation3], 4294967040 }
  0xef   :  { %128 = vsyncpa [#allocation3], 1 }

// kernel: time_transformer_decoder.10
= control target key start
LH: loop header
LB: loop body
LE: loop exit
PB: predicated region body
PF: predicated region fallthrough
CT: control target
= control target key end

     0   :  { %s1671_s13 = smov 0   ;;  %s1824_s0 = inlined_call_operand.vmem [shape: f32[2,8,32], index: 0, kind: input, shape index: {}, may-alias: {0,1}]   ;;  %s1825_s1 = inlined_call_operand.vmem [shape: f32[2,8,32], index: 1, kind: input, shape index: {}, may-alias: {0,1}]   ;;  %s1826_s2 = inlined_call_operand.vmem [shape: f32[32,32], index: 2, kind: input, shape index: {}]   ;;  %s1827_s3 = inlined_call_operand.vmem [shape: f32[1,32], index: 3, kind: input, shape index: {}]   ;;  %s1828_s4 = inlined_call_operand.vmem [shape: f32[32,64], index: 4, kind: input, shape index: {}]   ;;  %s1829_s5 = inlined_call_operand.vmem [shape: f32[1,64], index: 5, kind: input, shape index: {}]   ;;  %s1830_s6 = inlined_call_operand.vmem [shape: f32[32,32], index: 6, kind: input, shape index: {}]   ;;  %s1831_s7 = inlined_call_operand.vmem [shape: f32[1,32], index: 7, kind: input, shape index: {}]   ;;  %s1832_s8 = inlined_call_operand.vmem [shape: f32[1,32], index: 8, kind: input, shape index: {}]   ;;  %s1833_s9 = inlined_call_operand.vmem [shape: f32[1,32], index: 9, kind: input, shape index: {}]   ;;  %s1834_s10 = inlined_call_operand.vmem [shape: f32[2,8,32], index: 10, kind: output, shape index: {}]  }
   0x1 LB: > { %s1404_s14 = sadd.s32 4294967295, %s1601_s13   ;;  %p1408_p0 = scmp.ge.s32.totalorder %s1601_s13, 1  ;;  %s1601_s13 = sphi %s1671_s13, %s20_s13  }
   0x2   : > { %p320_p1 = scmp.lt.s32.totalorder %s1601_s13, 3 }
   0x4   : > { %p321_p2 = pnand %p1408_p0, %p320_p1 }
   0x5   : > { %v459_v0 = vld [vmem:[%s1828_s4] sm:$0xff] (!%p321_p2)  ;;  %v460_v1 = vld [vmem:[%s1828_s4 + $0x8] sm:$0xff] (!%p321_p2)  ;;  %v1603_v3 = vmov (!%p321_p2), 0.0|0.0   ;;  %v461_v6 = vld [vmem:[%s1828_s4 + $0x10] sm:$0xff] (!%p321_p2)  ;;  %p360_p3 = scmp.lt.s32.totalorder (!%p321_p2), %s1404_s14, 1  ;;  %vm1604_vm0 = vmmov (!%p321_p2), 0  }
   0x6   : > { %324 = sbr.rel (%p321_p2) target bundleno = 1745 (0x6d1), region = 60  ;;  %v374_v2 = vld [vmem:[%s1826_s2] sm:$0xff] (!%p321_p2)  ;;  %1544 = vmatprep.subr.bf16.mxu1 (!%p321_p2), %v1603_v3  ;;  %v1545_v4 = vpack.c.bf16 (!%p321_p2), %v460_v1, %v459_v0  ;;  %1538 = vmatprep.subr.bf16.mxu0 (!%p321_p2), %v1603_v3  ;;  %v375_v5 = vld [vmem:[%s1826_s2 + $0x8] sm:$0xff] (!%p321_p2)  ;;  %v462_v7 = vld [vmem:[%s1828_s4 + $0x18] sm:$0xff] (!%p321_p2)  ;;  %v1605_v9 = vmov (!%p321_p2), 0.0   ;;  %vm385_vm1 = vcmask (!%p321_p2), 261120  }
   0x7   : > { %v1539_v8 = vpack.c.bf16 (!%p321_p2), %v375_v5, %v374_v2  ;;  %1484 = vmatprep.mubr.msk.f32.mxu1 (!%p321_p2), %vm1604_vm0, %v1605_v9  ;;  %v376_v10 = vld [vmem:[%s1826_s2 + $0x10] sm:$0xff] (!%p321_p2)  ;;  %v377_v11 = vld [vmem:[%s1826_s2 + $0x18] sm:$0xff] (!%p321_p2)  ;;  %1473 = vmatprep.mubr.msk.f32.mxu0 (!%p321_p2), %vm1604_vm0, %v1605_v9  ;;  %v1548_v12 = vpack.c.bf16 (!%p321_p2), %v462_v7, %v461_v6  ;;  %v1414_v16 = vld [vmem:[%s1829_s5] ss:$0 sm:$0xff] (!%p321_p2)  ;;  %vm543_vm2 = vcmask (!%p321_p2), 64512   ;;  %s1606_s23 = smov (!%p321_p2), 112  }
   0x8   : > { %1546 = vmatpush3.bf16.msra.mxu1 (!%p321_p2), %v1545_v4  ;;  %v1542_v13 = vpack.c.bf16 (!%p321_p2), %v377_v11, %v376_v10  ;;  %v1412_v18 = vld [vmem:[%s1827_s3] ss:$0 sm:$0xff] (!%p321_p2)  ;;  %s1607_s24 = smov (!%p321_p2), 120   ;;  %s1608_s25 = smov (!%p321_p2), 104   ;;  %vm1219_vm3 = vcmask (!%p321_p2), 130048   ;;  %vm1221_vm4 = vcmask (!%p321_p2), 195584  }
   0x9   : > { %1540 = vmatpush3.bf16.msra.mxu0 (!%p321_p2), %v1539_v8  ;;  %1547 = vmatprep.subr.bf16.mxu1 (!%p321_p2), %v1603_v3  ;;  %s1609_s26 = smov (!%p321_p2), 96   ;;  %s1610_s27 = smov (!%p321_p2), 80  }
   0xa   : > { %1541 = vmatprep.subr.bf16.mxu0 (!%p321_p2), %v1603_v3  ;;  %s1611_s28 = smov (!%p321_p2), 72   ;;  %s1612_s29 = smov (!%p321_p2), 88  }
   0xb   : > { %s1613_s20 = smov (!%p321_p2), 8   ;;  %s1614_s21 = smov (!%p321_p2), 16  }
   0xc   : > { %1549 = vmatpush3.bf16.msra.mxu1 (!%p321_p2), %v1548_v12  ;;  %s1615_s22 = smov (!%p321_p2), 24  }
   0xd   : > { %s1836_s14 = smov (!%p360_p3, %s1404_s14), 1  ;;  %1543 = vmatpush3.bf16.msra.mxu0 %v1542_v13  ;;  %1487 = vmatprep.subr.mxu1 %v1605_v9 }
   0xe   : > { %s1711_s11 = sshll.u32 %s1836_s14, 3  ;;  %1497 = vmatprep.subr.mxu0 %v1605_v9 }
   0xf   : > { %s367_s16 = scalar_lea.vmem %s1825_s1, %s1711_s11  ;;  %s363_s19 = scalar_lea.vmem %s1824_s0, %s1711_s11 }
  0x10   : > { %v373_v14 = vld [vmem:[%s367_s16] sm:$0xff]  ;;  %s371_s12 = scalar_lea.vmem %s1834_s10, %s1711_s11 }
  0x11   : > { %v1721_v15 = vld [vmem:[%s363_s19] sm:$0xff]  ;;  %1485 = vmatmul.mubr.msk.f32.vlgmr.msra.gmra.mrb[0].mxu1 %vm385_vm1, %v373_v14 }
  0x12   : > { %1474 = vmatmul.mubr.msk.f32.vlgmr.msra.gmra.mrb[0].mxu0 %vm385_vm1, %v1721_v15  ;;  %1489 = vmatprep.mubr.msk.f32.mxu1 %vm1604_vm0, %v1605_v9 }
  0x13   : > { %1499 = vmatprep.mubr.msk.f32.mxu0 %vm1604_vm0, %v1605_v9 }
  0xe4   : > { %v539_v17 = vpop.f32.mrb[0].mxu1 }
  0xe5   : > { %v1738_v19 = vadd.f32 %v1414_v16, %v539_v17  ;;  %v1486_v20 = vpop.f32.mrb[1].mxu1  ;;  %v455_v21 = vpop.f32.mrb[0].mxu0 }
  0xe6   : > { %v1475_v22 = vpop.f32.mrb[1].mxu0  ;;  %v456_v23 = vadd.f32 %v1412_v18, %v455_v21 }
  0xe7   : > { %876 = vrot.lane.b32.xlu1 %v1738_v19, %s1606_s23  ;;  %710 = vrot.lane.b32.xlu0 %v1738_v19, %s1607_s24 }
  0xe8   : > { %1488 = vmatpush3.xpose.msk.msra.mxu1 %vm543_vm2, %v1738_v19 }
  0xe9   : > { %1492 = vmatprep.subr.mxu1 %v1605_v9 }
  0xeb   : > { %1490 = vmatmul.mubr.msk.f32.vlgmr.msra.gmra.mrb[2].mxu1 %vm543_vm2, %v456_v23  ;;  %874 = vrot.lane.b32.xlu1 %v456_v23, %s1606_s23 }
  0xec   : > { %708 = vrot.lane.b32.xlu0 %v456_v23, %s1607_s24  ;;  %1494 = vmatprep.mubr.msk.f32.mxu1 %vm1604_vm0, %v1605_v9 }
  0xef   : > { %1040 = vrot.lane.b32.xlu1 %v456_v23, %s1608_s25  ;;  %v1223_v23 = vld [vmem:[%s1830_s6] sm:$0xff] }
  0xf0   : > { %1042 = vrot.lane.b32.xlu0 %v1738_v19, %s1608_s25 }
 0x159   : > { %v711_v24 = vpop.permute.xlu0 %710  ;;  %v877_v25 = vpop.permute.xlu1 %876 }
 0x15a   : > { %1498 = vmatpush3.xpose.msk.msra.mxu0 %vm543_vm2, %v711_v24  ;;  %v1224_v24 = vld [vmem:[%s1830_s6 + $0x8] sm:$0xff] }
 0x15b   : > { %1507 = vmatprep.subr.mxu0 %v1605_v9 }
 0x15d   : > { %v875_v27 = vpop.permute.xlu1 %874 }
 0x15e   : > { %v709_v26 = vpop.permute.xlu0 %708 }
 0x15f   : > { %1500 = vmatmul.mubr.msk.f32.vlgmr.msra.gmra.mrb[2].mxu0 %vm543_vm2, %v709_v26  ;;  %v1226_v26 = vld [vmem:[%s1830_s6 + $0x18] sm:$0xff] }
 0x160   : > { %1508 = vmatpush3.xpose.msk.msra.mxu0 %vm543_vm2, %v877_v25  ;;  %1509 = vmatprep.mubr.msk.f32.mxu0 %vm1604_vm0, %v1605_v9  ;;  %v1551_v25 = vpack.c.bf16 %v1224_v24, %v1223_v23 }
 0x161   : > { %1517 = vmatprep.subr.mxu0 %v1605_v9  ;;  %v1041_v29 = vpop.permute.xlu1 %1040 }
 0x162   : > { %v1043_v28 = vpop.permute.xlu0 %1042 }
 0x163   : > { %1510 = vmatmul.mubr.msk.f32.vlgmr.msra.gmra.mrb[4].mxu0 %vm543_vm2, %v875_v27 }
 0x164   : > { %1518 = vmatpush3.xpose.msk.msra.mxu0 %vm543_vm2, %v1043_v28  ;;  %1519 = vmatprep.mubr.msk.f32.mxu0 %vm1604_vm0, %v1605_v9 }
 0x165   : > { %1550 = vmatprep.subr.bf16.mxu0 %v1603_v3 }
 0x167   : > { %1520 = vmatmul.mubr.msk.f32.vlgmr.msra.gmra.mrb[6].mxu0 %vm543_vm2, %v1041_v29 }
 0x168   : > { %1535 = vmatprep.mubr.msk.f32.mxu0 %vm1604_vm0, %v1605_v9  ;;  %1552 = vmatpush3.bf16.msra.mxu0 %v1551_v25 }
 0x169   : > { %1553 = vmatprep.subr.bf16.mxu0 %v1603_v3 }
 0x1be   : > { %v616_v30 = vpop.f32.mrb[2].mxu1 }
 0x1bf   : > { %v620_v31 = vmul.f32 0.35355338, %v616_v30  ;;  %v1491_v32 = vpop.f32.mrb[3].mxu1 }
 0x1c1   : > { %v621_v33 = vsel %vm543_vm2, %v620_v31, -inf }
 0x1c2   : > { %622 = vmax.xlane.f32.xlu0 %v621_v33 }
 0x232   : > { %v782_v34 = vpop.f32.mrb[2].mxu0 }
 0x233   : > { %v786_v35 = vmul.f32 0.35355338, %v782_v34  ;;  %v1501_v36 = vpop.f32.mrb[3].mxu0 }
 0x235   : > { %v787_v37 = vsel %vm543_vm2, %v786_v35, -inf }
 0x236   : > { %788 = vmax.xlane.f32.xlu1 %v787_v37  ;;  %v948_v38 = vpop.f32.mrb[4].mxu0 }
 0x237   : > { %v952_v39 = vmul.f32 0.35355338, %v948_v38  ;;  %v1511_v40 = vpop.f32.mrb[5].mxu0 }
 0x239   : > { %v953_v41 = vsel %vm543_vm2, %v952_v39, -inf }
 0x23a   : > { %954 = vmax.xlane.f32.xlu0 %v953_v41  ;;  %v1114_v42 = vpop.f32.mrb[6].mxu0 }
 0x23b   : > { %v1118_v43 = vmul.f32 0.35355338, %v1114_v42  ;;  %v1521_v44 = vpop.f32.mrb[7].mxu0 }
 0x23d   : > { %v1119_v45 = vsel %vm543_vm2, %v1118_v43, -inf }
 0x23e   : > { %1120 = vmax.xlane.f32.xlu0 %v1119_v45 }
 0x247   : > { %632 = vrot.lane.b32.xlu1 %v1738_v19, %s1609_s26 }
 0x24f   : > { %v623_v46 = vpop.xlane.xlu0 %622 }
 0x250   : > { %v624_v47 = vsub.f32 %v620_v31, %v623_v46 }
 0x252   : > { %v625_v48 = vmul.f32 1.442695, %v624_v47 }
 0x254   : > { %1577 = vpow2.f32 %v625_v48 }
 0x25e   : > { %v1578_v49 = vpop.eup %1577 }
 0x25f   : > { %v627_v50 = vsel %vm543_vm2, %v1578_v49, 0.0 }
 0x26b   : > { %628 = vadd.xlane.f32.xlu1 %v627_v50 }
 0x2c3   : > { %v789_v51 = vpop.xlane.xlu1 %788 }
 0x2c4   : > { %v790_v52 = vsub.f32 %v786_v35, %v789_v51 }
 0x2c6   : > { %v791_v53 = vmul.f32 1.442695, %v790_v52 }
 0x2c7   : > { %v633_v54 = vpop.permute.xlu1 %632  ;;  %v955_v55 = vpop.xlane.xlu0 %954 }
 0x2c8   : > { %1579 = vpow2.f32 %v791_v53  ;;  %v956_v56 = vsub.f32 %v952_v39, %v955_v55  ;;  %1493 = vmatpush3.msra.mxu1 %v633_v54  ;;  %v1428_v39 = vld [vmem:[%s1831_s7] ss:$0 sm:$0xff] }
 0x2c9   : > { %1502 = vmatprep.subr.mxu1 %v1605_v9  ;;  %v1431_v55 = vld [vmem:[%s1833_s9] ss:$0 sm:$0xff] }
 0x2ca   : > { %v957_v57 = vmul.f32 1.442695, %v956_v56 }
 0x2cb   : > { %v1121_v58 = vpop.xlane.xlu0 %1120 }
 0x2cc   : > { %1581 = vpow2.f32 %v957_v57  ;;  %v1122_v59 = vsub.f32 %v1118_v43, %v1121_v58 }
 0x2ce   : > { %v1123_v60 = vmul.f32 1.442695, %v1122_v59 }
 0x2d0   : > { %1583 = vpow2.f32 %v1123_v60 }
 0x2d2   : > { %v1580_v61 = vpop.eup %1579 }
 0x2d3   : > { %v793_v62 = vsel %vm543_vm2, %v1580_v61, 0.0 }
 0x2d4   : > { %794 = vadd.xlane.f32.xlu0 %v793_v62 }
 0x2d6   : > { %v1582_v63 = vpop.eup %1581 }
 0x2d7   : > { %v959_v0 = vsel %vm543_vm2, %v1582_v63, 0.0 }
 0x2d8   : > { %960 = vadd.xlane.f32.xlu1 %v959_v0 }
 0x2da   : > { %v1584_v1 = vpop.eup %1583 }
 0x2db   : > { %v1125_v2 = vsel %vm543_vm2, %v1584_v1, 0.0 }
 0x2dc   : > { %1126 = vadd.xlane.f32.xlu0 %v1125_v2 }
 0x2e9   : > { %964 = vrot.lane.b32.xlu1 %v1738_v19, %s1610_s27 }
 0x2ed   : > { %1130 = vrot.lane.b32.xlu1 %v1738_v19, %s1611_s28 }
 0x2f2   : > { %798 = vrot.lane.b32.xlu0 %v1738_v19, %s1612_s29 }
 0x2f8   : > { %v629_v4 = vpop.xlane.xlu1 %628 }
 0x2f9   : > { %1585 = vrcp.f32 %v629_v4 }
 0x303   : > { %v1586_v5 = vpop.eup %1585 }
 0x304   : > { %v631_v6 = vmul.f32 %v1586_v5, %v1578_v49 }
 0x306   : > { %1495 = vmatmul.mubr.msk.f32.vlgmr.msra.gmra.mrb[4].mxu1 %vm543_vm2, %v631_v6 }
 0x307   : > { %1504 = vmatprep.mubr.msk.f32.mxu1 %vm1604_vm0, %v1605_v9 }
 0x361   : > { %v795_v7 = vpop.xlane.xlu0 %794 }
 0x362   : > { %1587 = vrcp.f32 %v795_v7 }
 0x365   : > { %v961_v8 = vpop.xlane.xlu1 %960 }
 0x366   : > { %1589 = vrcp.f32 %v961_v8 }
 0x369   : > { %v1127_v10 = vpop.xlane.xlu0 %1126  ;;  %v965_v13 = vpop.permute.xlu1 %964 }
 0x36a   : > { %1591 = vrcp.f32 %v1127_v10 }
 0x36c   : > { %v1588_v11 = vpop.eup %1587 }
 0x36d   : > { %v797_v12 = vmul.f32 %v1588_v11, %v1580_v61  ;;  %v799_v14 = vpop.permute.xlu0 %798  ;;  %v1131_v18 = vpop.permute.xlu1 %1130 }
 0x36e   : > { %1503 = vmatpush3.msra.mxu1 %v799_v14 }
 0x36f   : > { %1505 = vmatmul.mubr.msk.f32.vlgmr.msra.gmra.mrb[6].mxu1 %vm543_vm2, %v797_v12  ;;  %1512 = vmatprep.subr.mxu1 %v1605_v9 }
 0x370   : > { %v1590_v16 = vpop.eup %1589  ;;  %1513 = vmatpush3.msra.mxu1 %v965_v13  ;;  %1514 = vmatprep.mubr.msk.f32.mxu1 %vm1604_vm0, %v1605_v9 }
 0x371   : > { %v963_v17 = vmul.f32 %v1590_v16, %v1582_v63  ;;  %1522 = vmatprep.subr.mxu1 %v1605_v9 }
 0x373   : > { %1515 = vmatmul.mubr.msk.f32.vlgmr.msra.gmra.mrb[8].mxu1 %vm543_vm2, %v963_v17 }
 0x374   : > { %v1592_v19 = vpop.eup %1591  ;;  %1523 = vmatpush3.msra.mxu1 %v1131_v18  ;;  %1524 = vmatprep.mubr.msk.f32.mxu1 %vm1604_vm0, %v1605_v9  ;;  %v1225_v9 = vld [vmem:[%s1830_s6 + $0x10] sm:$0xff] }
 0x375   : > { %v1129_v20 = vmul.f32 %v1592_v19, %v1584_v1  ;;  %v1554_v27 = vpack.c.bf16 %v1226_v26, %v1225_v9 }
 0x377   : > { %1525 = vmatmul.mubr.msk.f32.vlgmr.msra.gmra.mrb[10].mxu1 %vm543_vm2, %v1129_v20  ;;  %1555 = vmatpush3.bf16.msra.mxu0 %v1554_v27 }
 0x3d9   : > { %v704_v21 = vpop.f32.mrb[4].mxu1 }
 0x3da   : > { %v1496_v22 = vpop.f32.mrb[5].mxu1 }
 0x442   : > { %v870_v28 = vpop.f32.mrb[6].mxu1 }
 0x443   : > { %1207 = vrot.lane.b32.xlu0 %v870_v28, %s1613_s20  ;;  %v1506_v29 = vpop.f32.mrb[7].mxu1 }
 0x446   : > { %v1036_v30 = vpop.f32.mrb[8].mxu1 }
 0x447   : > { %1211 = vrot.lane.b32.xlu1 %v1036_v30, %s1614_s21  ;;  %v1516_v31 = vpop.f32.mrb[9].mxu1 }
 0x44a   : > { %v1202_v32 = vpop.f32.mrb[10].mxu1 }
 0x44b   : > { %1215 = vrot.lane.b32.xlu0 %v1202_v32, %s1615_s22  ;;  %v1526_v3 = vpop.f32.mrb[11].mxu1 }
 0x4b5   : > { %v1208_v33 = vpop.permute.xlu0 %1207 }
 0x4b6   : > { %v1218_v35 = vsel %vm543_vm2, %v704_v21, %v1208_v33 }
 0x4b9   : > { %v1212_v34 = vpop.permute.xlu1 %1211 }
 0x4ba   : > { %v1220_v36 = vsel %vm1219_vm3, %v1218_v35, %v1212_v34 }
 0x4bd   : > { %v1216_v37 = vpop.permute.xlu0 %1215 }
 0x4be   : > { %v1222_v38 = vsel %vm1221_vm4, %v1220_v36, %v1216_v37 }
 0x4bf   : > { %1536 = vmatmul.mubr.msk.f32.vlgmr.msra.gmra.mrb[8].mxu0 %vm385_vm1, %v1222_v38 }
 0x592   : > { %v1303_v40 = vpop.f32.mrb[8].mxu0 }
 0x593   : > { %v1304_v41 = vadd.f32 %v1428_v39, %v1303_v40  ;;  %v1537_v42 = vpop.f32.mrb[9].mxu0 }
 0x595   : > { %v1307_v43 = vadd.f32 %v1304_v41, %v1721_v15  ;;  %v1430_v15 = vld [vmem:[%s1832_s8] ss:$0 sm:$0xff] }
 0x597   : > { %v1310_v44 = vsel %vm385_vm1, %v1307_v43, 0.0 }
 0x598   : > { %1311 = vadd.xlane.f32.xlu1 %v1310_v44 }
 0x625   : > { %v1312_v45 = vpop.xlane.xlu1 %1311 }
 0x626   : > { %v1314_v46 = vmul.f32 0.03125, %v1312_v45 }
 0x628   : > { %v1315_v47 = vsub.f32 %v1307_v43, %v1314_v46 }
 0x62a   : > { %v1316_v48 = vmul.f32 %v1315_v47, %v1315_v47 }
 0x62c   : > { %v1317_v49 = vsel %vm385_vm1, %v1316_v48, 0.0 }
 0x62d   : > { %1318 = vadd.xlane.f32.xlu0 %v1317_v49 }
 0x6ba   : > { %v1319_v50 = vpop.xlane.xlu0 %1318 }
 0x6bb   : > { %v1320_v51 = vmul.f32 0.03125, %v1319_v50 }
 0x6bd   : > { %v1321_v52 = vadd.f32 1e-05, %v1320_v51 }
 0x6bf   : > { %1593 = vrsqrt.f32 %v1321_v52 }
 0x6c9   : > { %v1594_v53 = vpop.eup %1593 }
 0x6ca   : > { %v1323_v54 = vmul.f32 %v1594_v53, %v1315_v47 }
 0x6cc   : > { %v1330_v56 = vmul.f32 %v1430_v15, %v1323_v54 }
 0x6ce   : > { %v1337_v57 = vadd.f32 %v1431_v55, %v1330_v56 }
 0x6d0   : > { %1338 = vst.msk [vmem:[%s371_s12] sm:$0xff] %vm385_vm1, %v1337_v57 }
 0x6d1 PF: > { %s20_s13 = sadd.s32 1, %s1601_s13  }
 0x6d2   : > { %p17_p4 = scmp.ge.s32.totalorder %s20_s13, 4  }
 0x6d4   :  { %19 = sbr.rel (!%p17_p4) target bundleno = 1 (0x1), region = 93 }

// kernel: time_transformer_decoder.11
= control target key start
LH: loop header
LB: loop body
LE: loop exit
PB: predicated region body
PF: predicated region fallthrough
CT: control target
= control target key end

     0   :  { %s1832_s13 = smov 0   ;;  %s2016_s0 = inlined_call_operand.vmem [shape: f32[2,8,32], index: 0, kind: input, shape index: {}]   ;;  %s2017_s1 = inlined_call_operand.vmem [shape: f32[2,16,64], index: 1, kind: input, shape index: {}]   ;;  %s2018_s2 = inlined_call_operand.vmem [shape: f32[32,32], index: 2, kind: input, shape index: {}]   ;;  %s2019_s3 = inlined_call_operand.vmem [shape: f32[1,32], index: 3, kind: input, shape index: {}]   ;;  %s2020_s4 = inlined_call_operand.vmem [shape: f32[64,64], index: 4, kind: input, shape index: {}]   ;;  %s2021_s5 = inlined_call_operand.vmem [shape: f32[1,64], index: 5, kind: input, shape index: {}]   ;;  %s2022_s6 = inlined_call_operand.vmem [shape: f32[32,32], index: 6, kind: input, shape index: {}]   ;;  %s2023_s7 = inlined_call_operand.vmem [shape: f32[1,32], index: 7, kind: input, shape index: {}]   ;;  %s2024_s8 = inlined_call_operand.vmem [shape: f32[1,32], index: 8, kind: input, shape index: {}]   ;;  %s2025_s9 = inlined_call_operand.vmem [shape: f32[1,32], index: 9, kind: input, shape index: {}]   ;;  %s2026_s10 = inlined_call_operand.vmem [shape: f32[2,8,32], index: 10, kind: output, shape index: {}]  }
   0x1 LB: > { %s1448_s14 = sadd.s32 4294967295, %s1762_s13   ;;  %p1452_p0 = scmp.ge.s32.totalorder %s1762_s13, 1  ;;  %s1762_s13 = sphi %s1832_s13, %s20_s13  }
   0x2   : > { %p321_p1 = scmp.lt.s32.totalorder %s1762_s13, 3 }
   0x4   : > { %p322_p2 = pnand %p1452_p0, %p321_p1 }
   0x5   : > { %v463_v0 = vld [vmem:[%s2020_s4] sm:$0xff] (!%p322_p2)  ;;  %v464_v1 = vld [vmem:[%s2020_s4 + $0x8] sm:$0xff] (!%p322_p2)  ;;  %v465_v2 = vld [vmem:[%s2020_s4 + $0x10] sm:$0xff] (!%p322_p2)  ;;  %p362_p3 = scmp.lt.s32.totalorder (!%p322_p2), %s1448_s14, 1  ;;  %v1764_v5 = vmov (!%p322_p2), 0.0|0.0   ;;  %vm1765_vm0 = vmmov (!%p322_p2), 0  }
   0x6   : > { %325 = sbr.rel (%p322_p2) target bundleno = 3242 (0xcaa), region = 60  ;;  %v1632_v3 = vpack.c.bf16 (!%p322_p2), %v464_v1, %v463_v0  ;;  %v466_v4 = vld [vmem:[%s2020_s4 + $0x18] sm:$0xff] (!%p322_p2)  ;;  %1626 = vmatprep.subr.bf16.mxu0 (!%p322_p2), %v1764_v5  ;;  %v467_v7 = vld [vmem:[%s2020_s4 + $0x20] sm:$0xff] (!%p322_p2)  ;;  %v468_v8 = vld [vmem:[%s2020_s4 + $0x28] sm:$0xff] (!%p322_p2)  ;;  %v1766_v10 = vmov (!%p322_p2), 0.0   ;;  %vm478_vm1 = vcmask (!%p322_p2), 523264  }
   0x7   : > { %v1636_v6 = vpack.c.bf16 (!%p322_p2), %v466_v4, %v465_v2  ;;  %v378_v9 = vld [vmem:[%s2018_s2] sm:$0xff] (!%p322_p2)  ;;  %1537 = vmatprep.mubr.msk.f32.mxu0 (!%p322_p2), %vm1765_vm0, %v1766_v10  ;;  %v379_v11 = vld [vmem:[%s2018_s2 + $0x8] sm:$0xff] (!%p322_p2)  ;;  %v380_v12 = vld [vmem:[%s2018_s2 + $0x10] sm:$0xff] (!%p322_p2)  ;;  %v1640_v15 = vpack.c.bf16 (!%p322_p2), %v468_v8, %v467_v7  ;;  %vm389_vm2 = vcmask (!%p322_p2), 261120   ;;  %vm560_vm3 = vcmask (!%p322_p2), 64512   ;;  %s1767_s11 = smov (!%p322_p2), 96  }
   0x8   : > { %1633 = vmatprep.subr.bf16.mxu1 (!%p322_p2), %v1632_v3  ;;  %v381_v13 = vld [vmem:[%s2018_s2 + $0x18] sm:$0xff] (!%p322_p2)  ;;  %v1627_v14 = vpack.c.bf16 (!%p322_p2), %v379_v11, %v378_v9  ;;  %v469_v16 = vld [vmem:[%s2020_s4 + $0x30] sm:$0xff] (!%p322_p2)  ;;  %v1459_v25 = vld [vmem:[%s2021_s5] ss:$0 sm:$0xff] (!%p322_p2)  ;;  %s1768_s16 = smov (!%p322_p2), 120   ;;  %vm641_vm5 = vcmask (!%p322_p2), 130048  }
   0x9   : > { %1635 = vmatpush3.bf16.msra.mxu1 (!%p322_p2), %v1632_v3  ;;  %v470_v17 = vld [vmem:[%s2020_s4 + $0x38] sm:$0xff] (!%p322_p2)  ;;  %v1630_v19 = vpack.c.bf16 (!%p322_p2), %v381_v13, %v380_v12  ;;  %vm1909_vm4 = vmpackc.low (!%p322_p2), %vm560_vm3, %vm560_vm3  ;;  %v1457_v33 = vld [vmem:[%s2019_s3] ss:$0 sm:$0xff] (!%p322_p2)  ;;  %s1770_s19 = smov (!%p322_p2), 112   ;;  %s1771_s20 = smov (!%p322_p2), 80   ;;  %vm1265_vm6 = vcmask (!%p322_p2), 195584  }
   0xa   : > { %1637 = vmatprep.subr.bf16.mxu1 (!%p322_p2), %v1636_v6  ;;  %1628 = vmatpush3.bf16.msra.mxu0 (!%p322_p2), %v1627_v14  ;;  %v1644_v20 = vpack.c.bf16 (!%p322_p2), %v470_v17, %v469_v16  ;;  %s1773_s22 = smov (!%p322_p2), 72   ;;  %s1774_s23 = smov (!%p322_p2), 16  }
   0xb   : > { %1629 = vmatprep.subr.bf16.mxu0 (!%p322_p2), %v1764_v5  ;;  %s1775_s24 = smov (!%p322_p2), 8   ;;  %s1776_s15 = smov (!%p322_p2), 24  }
   0xd   : > { %s2030_s14 = smov (!%p362_p3, %s1448_s14), 1  ;;  %1639 = vmatpush3.bf16.msra.mxu1 %v1636_v6 }
   0xe   : > { %s1484_s17 = sshll.u32 %s2030_s14, 4  ;;  %s1453_s18 = sshll.u32 %s2030_s14, 3  ;;  %1641 = vmatprep.subr.bf16.mxu1 %v1640_v15  ;;  %1631 = vmatpush3.bf16.msra.mxu0 %v1630_v19 }
   0xf   : > { %s370_s21 = scalar_lea.vmem %s2017_s1, %s1484_s17  ;;  %s365_s28 = scalar_lea.vmem %s2016_s0, %s1453_s18  ;;  %1648 = vmatprep.subr.bf16.mxu0 %v1764_v5 }
  0x10   : > { %v376_v18 = vld [vmem:[%s370_s21] sm:$0xff]  ;;  %v377_v22 = vld [vmem:[%s370_s21 + $0x8] sm:$0xff]  ;;  %s1769_s17 = smov 88   ;;  %s1772_s21 = smov 104  }
  0x11   : > { %1556 = vmatprep.mubr.msk.f32.mxu1 %vm478_vm1, %v376_v18  ;;  %v1893_v21 = vld [vmem:[%s365_s28] sm:$0xff]  ;;  %1643 = vmatpush3.bf16.msra.mxu1 %v1640_v15  ;;  %s374_s25 = scalar_lea.vmem %s2026_s10, %s1453_s18 }
  0x12   : > { %1645 = vmatprep.subr.bf16.mxu1 %v1644_v20  ;;  %1538 = vmatmul.mubr.msk.f32.vlgmr.msra.gmra.mrb[0].mxu0 %vm389_vm2, %v1893_v21 }
  0x13   : > { %1563 = vmatprep.mubr.msk.f32.mxu0 %vm1765_vm0, %v1766_v10 }
  0x15   : > { %1647 = vmatpush3.bf16.msra.mxu1 %v1644_v20 }
  0x16   : > { %1652 = vmatprep.subr.bf16.mxu1 %v1764_v5 }
  0x18   : > { %1557 = vmatmul.mubr.msk.f32.vlgmr.msra.gmra.mrb[0].mxu1 %vm478_vm1, %v377_v22 }
  0x19   : > { %1570 = vmatprep.mubr.msk.f32.mxu1 %vm1765_vm0, %v1766_v10 }
  0xe5   : > { %v459_v23 = vpop.f32.mrb[0].mxu0 }
  0xe6   : > { %v1539_v24 = vpop.f32.mrb[1].mxu0  ;;  %v1922_v34 = vadd.f32 %v1457_v33, %v459_v23 }
  0xeb   : > { %v1558_v26 = vpop.f32.mrb[0].mxu1 }
  0xec   : > { %v557_v27 = vadd.f32 %v1558_v26, %v1459_v25  ;;  %v551_v28 = vpop.f32.mrb[1].mxu1 }
  0xed   : > { %v552_v29 = vadd.f32 %v1459_v25, %v551_v28 }
  0xef   : > { %v1913_v31 = vpack.i.bf16 %v557_v27, %v552_v29  ;;  %v1649_v32 = vpack.c.bf16 %v557_v27, %v552_v29 }
  0xf1   : > { %1704 = vrot.lane.b32.xlu1 %v1913_v31, %s1767_s11  ;;  %1651 = vmatpush3.bf16.xpose.msk.msra.mxu0 %vm1909_vm4, %v1649_v32 }
  0xf2   : > { %1659 = vmatprep.subr.bf16.mxu0 %v1764_v5 }
  0xf5   : > { %1709 = vrot.lane.b32.xlu1 %v1913_v31, %s1768_s16 }
  0xf8   : > { %1564 = vmatmul.mubr.msk.f32.vlgmr.msra.gmra.mrb[2].mxu0 %vm560_vm3, %v1922_v34 }
  0xf9   : > { %1584 = vmatprep.mubr.msk.f32.mxu0 %vm1765_vm0, %v1766_v10 }
 0x163   : > { %v1705_v35 = vpop.permute.xlu1 %1704 }
 0x164   : > { %v1707_v36 = vunpack.i.h.bf16 %v1705_v35  ;;  %v1706_v37 = vunpack.i.l.bf16 %v1705_v35 }
 0x166   : > { %v1653_v38 = vpack.c.bf16 %v1707_v36, %v1706_v37 }
 0x167   : > { %v1710_v49 = vpop.permute.xlu1 %1709 }
 0x168   : > { %1654 = vmatpush3.bf16.msra.mxu1 %v1653_v38  ;;  %v1712_v50 = vunpack.i.h.bf16 %v1710_v49  ;;  %v1711_v51 = vunpack.i.l.bf16 %v1710_v49 }
 0x169   : > { %1655 = vmatprep.subr.bf16.mxu1 %v1764_v5 }
 0x16a   : > { %v1656_v54 = vpack.c.bf16 %v1712_v50, %v1711_v51 }
 0x1cb   : > { %v636_v39 = vpop.f32.mrb[2].mxu0 }
 0x1cc   : > { %v640_v40 = vmul.f32 0.35355338, %v636_v39  ;;  %v1565_v41 = vpop.f32.mrb[3].mxu0 }
 0x1ce   : > { %v642_v42 = vsel %vm641_vm5, %v640_v40, -inf }
 0x1cf   : > { %643 = vmax.xlane.f32.xlu0 %v642_v42 }
 0x25c   : > { %v644_v43 = vpop.xlane.xlu0 %643 }
 0x25d   : > { %v645_v44 = vsub.f32 %v640_v40, %v644_v43 }
 0x25f   : > { %v646_v45 = vmul.f32 1.442695, %v645_v44 }
 0x261   : > { %1738 = vpow2.f32 %v646_v45 }
 0x26b   : > { %v1739_v46 = vpop.eup %1738 }
 0x26c   : > { %v648_v47 = vsel %vm641_vm5, %v1739_v46, 0.0 }
 0x26d   : > { %649 = vadd.xlane.f32.xlu0 %v648_v47 }
 0x283   : > { %732 = vrot.lane.b32.xlu0 %v1922_v34, %s1768_s16 }
 0x2fa   : > { %v650_v48 = vpop.xlane.xlu0 %649 }
 0x2fb   : > { %1740 = vrcp.f32 %v650_v48 }
 0x2fe   : > { %v733_v55 = vpop.permute.xlu0 %732 }
 0x305   : > { %v1741_v52 = vpop.eup %1740 }
 0x306   : > { %v652_v53 = vmul.f32 %v1741_v52, %v1739_v46 }
 0x308   : > { %1571 = vmatmul.mubr.msk.f32.vlgmr.msra.gmra.mrb[2].mxu1 %vm641_vm5, %v652_v53 }
 0x309   : > { %1658 = vmatpush3.bf16.xpose.msk.msra.mxu1 %vm1909_vm4, %v1656_v54  ;;  %1577 = vmatprep.mubr.msk.f32.mxu1 %vm1765_vm0, %v1766_v10 }
 0x30a   : > { %1666 = vmatprep.subr.bf16.mxu1 %v1764_v5 }
 0x310   : > { %1578 = vmatmul.mubr.msk.f32.vlgmr.msra.gmra.mrb[4].mxu1 %vm560_vm3, %v733_v55 }
 0x311   : > { %1598 = vmatprep.mubr.msk.f32.mxu1 %vm1765_vm0, %v1766_v10 }
 0x3db   : > { %v1942_v56 = vpop.f32.mrb[2].mxu1 }
 0x3dc   : > { %v1572_v57 = vpop.f32.mrb[3].mxu1 }
 0x3e3   : > { %v810_v58 = vpop.f32.mrb[4].mxu1 }
 0x3e4   : > { %v814_v59 = vmul.f32 0.35355338, %v810_v58  ;;  %v1579_v60 = vpop.f32.mrb[5].mxu1 }
 0x3e5   : > { %v1267_v60 = vld [vmem:[%s2022_s6] sm:$0xff] }
 0x3e6   : > { %v815_v61 = vsel %vm641_vm5, %v814_v59, -inf }
 0x3e7   : > { %816 = vmax.xlane.f32.xlu1 %v815_v61  ;;  %v1268_v61 = vld [vmem:[%s2022_s6 + $0x8] sm:$0xff] }
 0x3f8   : > { %1714 = vrot.lane.b32.xlu1 %v1913_v31, %s1769_s17 }
 0x3fc   : > { %905 = vrot.lane.b32.xlu1 %v1922_v34, %s1770_s19 }
 0x474   : > { %v817_v62 = vpop.xlane.xlu1 %816 }
 0x475   : > { %v818_v63 = vsub.f32 %v814_v59, %v817_v62  ;;  %v1269_v62 = vld [vmem:[%s2022_s6 + $0x10] sm:$0xff] }
 0x477   : > { %v819_v0 = vmul.f32 1.442695, %v818_v63  ;;  %v1677_v63 = vpack.c.bf16 %v1268_v61, %v1267_v60 }
 0x478   : > { %v1715_v1 = vpop.permute.xlu1 %1714 }
 0x479   : > { %1742 = vpow2.f32 %v819_v0  ;;  %v1717_v2 = vunpack.i.h.bf16 %v1715_v1  ;;  %v1716_v3 = vunpack.i.l.bf16 %v1715_v1  ;;  %v1270_v0 = vld [vmem:[%s2022_s6 + $0x18] sm:$0xff] }
 0x47a   : > { %v1680_v1 = vpack.c.bf16 %v1270_v0, %v1269_v62 }
 0x47b   : > { %v1660_v4 = vpack.c.bf16 %v1717_v2, %v1716_v3 }
 0x47c   : > { %v906_v16 = vpop.permute.xlu1 %905 }
 0x47d   : > { %1661 = vmatpush3.bf16.msra.mxu0 %v1660_v4 }
 0x47e   : > { %1662 = vmatprep.subr.bf16.mxu0 %v1764_v5 }
 0x483   : > { %v1743_v6 = vpop.eup %1742 }
 0x484   : > { %v821_v7 = vsel %vm641_vm5, %v1743_v6, 0.0 }
 0x485   : > { %822 = vadd.xlane.f32.xlu0 %v821_v7 }
 0x49b   : > { %1719 = vrot.lane.b32.xlu0 %v1913_v31, %s1770_s19 }
 0x512   : > { %v823_v8 = vpop.xlane.xlu0 %822 }
 0x513   : > { %1744 = vrcp.f32 %v823_v8 }
 0x516   : > { %v1720_v9 = vpop.permute.xlu0 %1719 }
 0x517   : > { %v1722_v11 = vunpack.i.h.bf16 %v1720_v9  ;;  %v1721_v12 = vunpack.i.l.bf16 %v1720_v9 }
 0x519   : > { %v1663_v15 = vpack.c.bf16 %v1722_v11, %v1721_v12 }
 0x51d   : > { %v1745_v13 = vpop.eup %1744 }
 0x51e   : > { %v825_v14 = vmul.f32 %v1745_v13, %v1743_v6 }
 0x520   : > { %1585 = vmatmul.mubr.msk.f32.vlgmr.msra.gmra.mrb[4].mxu0 %vm641_vm5, %v825_v14 }
 0x521   : > { %1665 = vmatpush3.bf16.xpose.msk.msra.mxu0 %vm1909_vm4, %v1663_v15  ;;  %1591 = vmatprep.mubr.msk.f32.mxu0 %vm1765_vm0, %v1766_v10 }
 0x522   : > { %1673 = vmatprep.subr.bf16.mxu0 %v1764_v5 }
 0x528   : > { %1592 = vmatmul.mubr.msk.f32.vlgmr.msra.gmra.mrb[6].mxu0 %vm560_vm3, %v906_v16 }
 0x529   : > { %1612 = vmatprep.mubr.msk.f32.mxu0 %vm1765_vm0, %v1766_v10 }
 0x5f3   : > { %v901_v17 = vpop.f32.mrb[4].mxu0 }
 0x5f4   : > { %v1586_v18 = vpop.f32.mrb[5].mxu0 }
 0x5fb   : > { %v983_v19 = vpop.f32.mrb[6].mxu0 }
 0x5fc   : > { %v987_v20 = vmul.f32 0.35355338, %v983_v19  ;;  %v1593_v22 = vpop.f32.mrb[7].mxu0 }
 0x5fe   : > { %v988_v23 = vsel %vm641_vm5, %v987_v20, -inf }
 0x5ff   : > { %989 = vmax.xlane.f32.xlu1 %v988_v23 }
 0x610   : > { %1724 = vrot.lane.b32.xlu1 %v1913_v31, %s1771_s20 }
 0x614   : > { %1078 = vrot.lane.b32.xlu1 %v1922_v34, %s1772_s21 }
 0x68c   : > { %v990_v24 = vpop.xlane.xlu1 %989 }
 0x68d   : > { %v991_v25 = vsub.f32 %v987_v20, %v990_v24 }
 0x68f   : > { %v992_v26 = vmul.f32 1.442695, %v991_v25 }
 0x690   : > { %v1725_v27 = vpop.permute.xlu1 %1724 }
 0x691   : > { %1746 = vpow2.f32 %v992_v26  ;;  %v1727_v28 = vunpack.i.h.bf16 %v1725_v27  ;;  %v1726_v29 = vunpack.i.l.bf16 %v1725_v27  ;;  %v1481_v26 = vld [vmem:[%s2025_s9] ss:$0 sm:$0xff] }
 0x693   : > { %v1667_v32 = vpack.c.bf16 %v1727_v28, %v1726_v29 }
 0x694   : > { %v1079_v42 = vpop.permute.xlu1 %1078 }
 0x695   : > { %1668 = vmatpush3.bf16.msra.mxu1 %v1667_v32 }
 0x696   : > { %1669 = vmatprep.subr.bf16.mxu1 %v1764_v5 }
 0x69b   : > { %v1747_v33 = vpop.eup %1746 }
 0x69c   : > { %v994_v35 = vsel %vm641_vm5, %v1747_v33, 0.0 }
 0x69d   : > { %995 = vadd.xlane.f32.xlu0 %v994_v35 }
 0x6b3   : > { %1729 = vrot.lane.b32.xlu0 %v1913_v31, %s1772_s21 }
 0x72a   : > { %v996_v36 = vpop.xlane.xlu0 %995 }
 0x72b   : > { %1748 = vrcp.f32 %v996_v36 }
 0x72e   : > { %v1730_v34 = vpop.permute.xlu0 %1729 }
 0x72f   : > { %v1732_v37 = vunpack.i.h.bf16 %v1730_v34  ;;  %v1731_v38 = vunpack.i.l.bf16 %v1730_v34 }
 0x731   : > { %v1670_v41 = vpack.c.bf16 %v1732_v37, %v1731_v38 }
 0x735   : > { %v1749_v39 = vpop.eup %1748 }
 0x736   : > { %v998_v40 = vmul.f32 %v1749_v39, %v1747_v33 }
 0x738   : > { %1599 = vmatmul.mubr.msk.f32.vlgmr.msra.gmra.mrb[6].mxu1 %vm641_vm5, %v998_v40 }
 0x739   : > { %1672 = vmatpush3.bf16.xpose.msk.msra.mxu1 %vm1909_vm4, %v1670_v41  ;;  %1605 = vmatprep.mubr.msk.f32.mxu1 %vm1765_vm0, %v1766_v10 }
 0x740   : > { %1606 = vmatmul.mubr.msk.f32.vlgmr.msra.gmra.mrb[8].mxu1 %vm560_vm3, %v1079_v42 }
 0x80b   : > { %v1074_v43 = vpop.f32.mrb[6].mxu1 }
 0x80c   : > { %v1600_v44 = vpop.f32.mrb[7].mxu1 }
 0x813   : > { %v1156_v45 = vpop.f32.mrb[8].mxu1 }
 0x814   : > { %v1160_v46 = vmul.f32 0.35355338, %v1156_v45  ;;  %v1607_v47 = vpop.f32.mrb[9].mxu1 }
 0x816   : > { %v1161_v48 = vsel %vm641_vm5, %v1160_v46, -inf }
 0x817   : > { %1162 = vmax.xlane.f32.xlu1 %v1161_v48 }
 0x828   : > { %1734 = vrot.lane.b32.xlu1 %v1913_v31, %s1773_s22 }
 0x82c   : > { %1256 = vrot.lane.b32.xlu1 %v1074_v43, %s1774_s23 }
 0x8a4   : > { %v1163_v30 = vpop.xlane.xlu1 %1162 }
 0x8a5   : > { %v1164_v49 = vsub.f32 %v1160_v46, %v1163_v30 }
 0x8a7   : > { %v1165_v50 = vmul.f32 1.442695, %v1164_v49 }
 0x8a8   : > { %v1735_v51 = vpop.permute.xlu1 %1734 }
 0x8a9   : > { %1750 = vpow2.f32 %v1165_v50  ;;  %v1737_v52 = vunpack.i.h.bf16 %v1735_v51  ;;  %v1736_v53 = vunpack.i.l.bf16 %v1735_v51 }
 0x8ab   : > { %v1674_v54 = vpack.c.bf16 %v1737_v52, %v1736_v53 }
 0x8ac   : > { %v1257_v4 = vpop.permute.xlu1 %1256 }
 0x8ad   : > { %1675 = vmatpush3.bf16.msra.mxu0 %v1674_v54 }
 0x8ae   : > { %1676 = vmatprep.subr.bf16.mxu0 %v1764_v5 }
 0x8b3   : > { %v1751_v55 = vpop.eup %1750 }
 0x8b4   : > { %v1167_v57 = vsel %vm641_vm5, %v1751_v55, 0.0 }
 0x8b5   : > { %1168 = vadd.xlane.f32.xlu0 %v1167_v57 }
 0x8cb   : > { %1252 = vrot.lane.b32.xlu0 %v901_v17, %s1775_s24 }
 0x942   : > { %v1169_v31 = vpop.xlane.xlu0 %1168 }
 0x943   : > { %1752 = vrcp.f32 %v1169_v31 }
 0x946   : > { %v1253_v3 = vpop.permute.xlu0 %1252 }
 0x947   : > { %v1263_v6 = vsel %vm560_vm3, %v1942_v56, %v1253_v3 }
 0x948   : > { %v1264_v7 = vsel %vm641_vm5, %v1263_v6, %v1257_v4 }
 0x94d   : > { %v1753_v58 = vpop.eup %1752 }
 0x94e   : > { %v1171_v59 = vmul.f32 %v1753_v58, %v1751_v55 }
 0x950   : > { %1613 = vmatmul.mubr.msk.f32.vlgmr.msra.gmra.mrb[8].mxu0 %vm641_vm5, %v1171_v59 }
 0x951   : > { %1623 = vmatprep.mubr.msk.f32.mxu0 %vm1765_vm0, %v1766_v10  ;;  %1678 = vmatpush3.bf16.msra.mxu0 %v1677_v63 }
 0x952   : > { %1679 = vmatprep.subr.bf16.mxu0 %v1764_v5  ;;  %v1478_v5 = vld [vmem:[%s2023_s7] ss:$0 sm:$0xff] }
 0x955   : > { %1681 = vmatpush3.bf16.msra.mxu0 %v1680_v1 }
 0xa23   : > { %v1247_v10 = vpop.f32.mrb[8].mxu0 }
 0xa24   : > { %1260 = vrot.lane.b32.xlu1 %v1247_v10, %s1776_s15  ;;  %v1614_v2 = vpop.f32.mrb[9].mxu0 }
 0xa96   : > { %v1261_v8 = vpop.permute.xlu1 %1260 }
 0xa97   : > { %v1266_v9 = vsel %vm1265_vm6, %v1264_v7, %v1261_v8 }
 0xa98   : > { %1624 = vmatmul.mubr.msk.f32.vlgmr.msra.gmra.mrb[10].mxu0 %vm389_vm2, %v1266_v9 }
 0xb6b   : > { %v1347_v11 = vpop.f32.mrb[10].mxu0 }
 0xb6c   : > { %v1348_v12 = vadd.f32 %v1478_v5, %v1347_v11  ;;  %v1625_v13 = vpop.f32.mrb[11].mxu0 }
 0xb6e   : > { %v1351_v14 = vadd.f32 %v1348_v12, %v1893_v21  ;;  %v1480_v21 = vld [vmem:[%s2024_s8] ss:$0 sm:$0xff] }
 0xb70   : > { %v1354_v15 = vsel %vm389_vm2, %v1351_v14, 0.0 }
 0xb71   : > { %1355 = vadd.xlane.f32.xlu1 %v1354_v15 }
 0xbfe   : > { %v1356_v56 = vpop.xlane.xlu1 %1355 }
 0xbff   : > { %v1358_v16 = vmul.f32 0.03125, %v1356_v56 }
 0xc01   : > { %v1359_v17 = vsub.f32 %v1351_v14, %v1358_v16 }
 0xc03   : > { %v1360_v18 = vmul.f32 %v1359_v17, %v1359_v17 }
 0xc05   : > { %v1361_v19 = vsel %vm389_vm2, %v1360_v18, 0.0 }
 0xc06   : > { %1362 = vadd.xlane.f32.xlu0 %v1361_v19 }
 0xc93   : > { %v1363_v20 = vpop.xlane.xlu0 %1362 }
 0xc94   : > { %v1364_v22 = vmul.f32 0.03125, %v1363_v20 }
 0xc96   : > { %v1365_v23 = vadd.f32 1e-05, %v1364_v22 }
 0xc98   : > { %1754 = vrsqrt.f32 %v1365_v23 }
 0xca2   : > { %v1755_v24 = vpop.eup %1754 }
 0xca3   : > { %v1367_v25 = vmul.f32 %v1755_v24, %v1359_v17 }
 0xca5   : > { %v1374_v27 = vmul.f32 %v1480_v21, %v1367_v25 }
 0xca7   : > { %v1381_v28 = vadd.f32 %v1481_v26, %v1374_v27 }
 0xca9   : > { %1382 = vst.msk [vmem:[%s374_s25] sm:$0xff] %vm389_vm2, %v1381_v28 }
 0xcaa PF: > { %s20_s13 = sadd.s32 1, %s1762_s13  }
 0xcab   : > { %p17_p4 = scmp.ge.s32.totalorder %s20_s13, 4  }
 0xcad   :  { %19 = sbr.rel (!%p17_p4) target bundleno = 1 (0x1), region = 93 }

</bundles_post_ra>
